<compile_context>
chip_gen: v7x
topology: tpu7x:2x2x1
jax: 0.10.0
libtpu: 0.0.40
codegen_flags: <defaults>
</compile_context>

<pallas_src>
import functools

import jax
import jax.numpy as jnp
import numpy as np
from jax import lax
from jax.experimental import pallas as pl
from jax.experimental.pallas import tpu as pltpu


def _vmem_limit_bytes():
    """Generation-dependent scoped-VMEM budget (leave headroom for the
    double-buffered BlockSpec inputs)."""
    try:
        cap = pltpu.get_tpu_info().vmem_capacity_bytes
    except Exception:
        cap = 64 * 1024 * 1024  # conservative fallback (v7x-sized)
    return int(min(max(cap * 3 // 4, 32 * 1024 * 1024), 112 * 1024 * 1024))


_VMEM_LIMIT = _vmem_limit_bytes()


# ---------------------------------------------------------------------------
# Pallas kernels
# ---------------------------------------------------------------------------
def _make_conv_kernel(Hp, Wp, Cin, Cout, fuse_bn_relu):
    """3x3 conv (pad=1), optional fused BN+ReLU prologue, BN-stat emission.

    No conv bias: it is exactly cancelled by the batch-stat BatchNorm that
    follows each conv in DoubleConv.
    """
    HW = Hp * Wp

    def kernel(*refs):
        if fuse_bn_relu:
            (x_ref, scale_ref, shift_ref, w_ref,
             y_ref, sum_ref, ssq_ref, pad_ref) = refs
        else:
            (x_ref, w_ref, y_ref, sum_ref, ssq_ref, pad_ref) = refs

        # Zero ONLY the pad halo, and only once: the scratch persists across
        # grid steps and the interior is fully overwritten every step.
        @pl.when(pl.program_id(0) == 0)
        def _zero_halo():
            pad_ref[0:1, :, :] = jnp.zeros((1, Wp + 2, Cin), jnp.float32)
            pad_ref[Hp + 1:Hp + 2, :, :] = jnp.zeros((1, Wp + 2, Cin), jnp.float32)
            pad_ref[:, 0:1, :] = jnp.zeros((Hp + 2, 1, Cin), jnp.float32)
            pad_ref[:, Wp + 1:Wp + 2, :] = jnp.zeros((Hp + 2, 1, Cin), jnp.float32)

        x = x_ref[0].astype(jnp.float32)                      # (Hp, Wp, Cin)
        if fuse_bn_relu:
            # BatchNorm (precomputed scale/shift) + ReLU in f32 (no bf16 VPU on v5e).
            x = jnp.maximum(x * scale_ref[...] + shift_ref[...], 0.0)

        # Interior of the zero-padded VMEM buffer (padding after the fused ReLU).
        pad_ref[1:Hp + 1, 1:Wp + 1, :] = x

        def tap(dy, dx):
            # (Hp, Wp, Cin) f32 window -> (HW, Cin) bf16. The reshape merges the
            # leading dims above the lane axis (layout-preserving for Wp % 8 == 0)
            # and the bf16 cast happens BEFORE any concat (half-width im2col).
            return (pad_ref[dy:dy + Hp, dx:dx + Wp, :]
                    .reshape(HW, Cin).astype(jnp.bfloat16))

        if Cin >= 128:
            # Wide channels: 9 accumulating K=Cin matmuls (MXU contraction depth
            # already full) — no 9x im2col materialisation at all.
            acc = None
            t = 0
            for dy in range(3):
                for dx in range(3):
                    p = jnp.dot(tap(dy, dx), w_ref[t * Cin:(t + 1) * Cin, :],
                                preferred_element_type=jnp.float32)
                    acc = p if acc is None else acc + p
                    t += 1
        else:
            # Narrow channels (9*Cin < MXU depth): fold all 9 taps into a single
            # K=9*Cin matmul; im2col buffer is bf16.
            patches = jnp.concatenate(
                [tap(dy, dx) for dy in range(3) for dx in range(3)], axis=-1)
            acc = jnp.dot(patches, w_ref[...],
                          preferred_element_type=jnp.float32)  # (HW, Cout) f32

        y_ref[...] = acc[None].astype(y_ref.dtype)             # (1, HW, Cout)

        # Per-block channel sums / sums-of-squares for the following BatchNorm
        # (replaces a separate full-tensor mean/var pass over HBM).
        sum_ref[...] = jnp.sum(acc, axis=0, keepdims=True)[None]
        ssq_ref[...] = jnp.sum(acc * acc, axis=0, keepdims=True)[None]

    return kernel


def _bn_relu_to_nchw_kernel(y_ref, scale_ref, shift_ref, o_ref):
    """BN2 + ReLU epilogue with fused NHWC->channels-first output."""
    y = y_ref[0].astype(jnp.float32)                           # (HW, C)
    v = jnp.maximum(y * scale_ref[...] + shift_ref[...], 0.0)
    # Emit (C, HW): the (N, C, Hp, Wp) reshape in the wrapper is metadata-only,
    # so the module's NCHW output costs no extra HBM pass. At realistic shapes
    # HW >= 128 so this store is also lane-dense.
    o_ref[...] = jnp.transpose(v)[None]                        # (1, C, HW)


# ---------------------------------------------------------------------------
# Wrappers around pallas_call
# ---------------------------------------------------------------------------
def conv3x3_fused(x_nhwc, w_flat, scale=None, shift=None):
    """x_nhwc: (N, Hp, Wp, Cin) bf16; w_flat: (9*Cin, Cout) bf16.
    Optional scale/shift (1, Cin) f32 apply a fused BN+ReLU to the input.
    Returns (y, sums, ssqs): y (N, Hp*Wp, Cout) bf16 + per-block BN stats (f32)."""
    N, Hp, Wp, Cin = x_nhwc.shape
    K, Cout = w_flat.shape
    assert K == 9 * Cin
    fuse = scale is not None

    kernel = _make_conv_kernel(Hp, Wp, Cin, Cout, fuse)

    in_specs = [pl.BlockSpec((1, Hp, Wp, Cin), lambda n: (n, 0, 0, 0))]
    inputs = [x_nhwc]
    if fuse:
        in_specs += [pl.BlockSpec((1, Cin), lambda n: (0, 0)),
                     pl.BlockSpec((1, Cin), lambda n: (0, 0))]
        inputs += [scale, shift]
    in_specs += [pl.BlockSpec((K, Cout), lambda n: (0, 0))]
    inputs += [w_flat]

    out_shape = (jax.ShapeDtypeStruct((N, Hp * Wp, Cout), jnp.bfloat16),
                 jax.ShapeDtypeStruct((N, 1, Cout), jnp.float32),
                 jax.ShapeDtypeStruct((N, 1, Cout), jnp.float32))
    out_specs = (pl.BlockSpec((1, Hp * Wp, Cout), lambda n: (n, 0, 0)),
                 pl.BlockSpec((1, 1, Cout), lambda n: (n, 0, 0)),
                 pl.BlockSpec((1, 1, Cout), lambda n: (n, 0, 0)))

    return pl.pallas_call(
        kernel,
        out_shape=out_shape,
        grid=(N,),
        in_specs=in_specs,
        out_specs=out_specs,
        scratch_shapes=[pltpu.VMEM((Hp + 2, Wp + 2, Cin), jnp.float32)],
        compiler_params=pltpu.CompilerParams(
            dimension_semantics=("parallel",),
            vmem_limit_bytes=_VMEM_LIMIT),
    )(*inputs)


def bn_relu_to_nchw(y, scale, shift):
    """y: (N, HW, C) bf16; scale/shift: (1, C) f32 -> (N, C, HW) f32."""
    N, HW, C = y.shape
    return pl.pallas_call(
        _bn_relu_to_nchw_kernel,
        out_shape=jax.ShapeDtypeStruct((N, C, HW), jnp.float32),
        grid=(N,),
        in_specs=[pl.BlockSpec((1, HW, C), lambda n: (n, 0, 0)),
                  pl.BlockSpec((1, C), lambda n: (0, 0)),
                  pl.BlockSpec((1, C), lambda n: (0, 0))],
        out_specs=pl.BlockSpec((1, C, HW), lambda n: (n, 0, 0)),
        compiler_params=pltpu.CompilerParams(
            dimension_semantics=("parallel",),
            vmem_limit_bytes=_VMEM_LIMIT),
    )(y, scale, shift)


def _bn_scale_shift(sums, ssqs, count, gamma, beta, eps=1e-5):
    """Combine per-block sums into BatchNorm scale/shift (biased batch variance)."""
    total = jnp.sum(sums, axis=0).reshape(-1)        # (C,)
    total_sq = jnp.sum(ssqs, axis=0).reshape(-1)
    mean = total / count
    var = jnp.maximum(total_sq / count - mean * mean, 0.0)
    inv = gamma / jnp.sqrt(var + eps)
    scale = inv.reshape(1, -1).astype(jnp.float32)
    shift = (beta - mean * inv).reshape(1, -1).astype(jnp.float32)
    return scale, shift


# ---------------------------------------------------------------------------
# Down module forward
# ---------------------------------------------------------------------------
def down_forward(params, x_nchw, eps=1e-5):
    """Equivalent of Down.forward: MaxPool2d(2) -> DoubleConv. NCHW in/out."""
    N, Cin, H, W = x_nchw.shape
    Hp, Wp = H // 2, W // 2

    # MaxPool2d(2) + NCHW->NHWC shuffle + bf16 cast in ONE fused XLA pass
    # (the transpose feeds a reduce, so XLA reads the full-res input once and
    # writes only the pooled bf16 activation).
    # TODO(synk): fold the pool itself into kernel A (strided in-kernel loads)
    #             to also remove the pooled-tensor HBM write/read.
    x = jnp.transpose(x_nchw, (0, 2, 3, 1)).astype(jnp.float32)       # NHWC
    x = x.reshape(N, Hp, 2, Wp, 2, Cin).max(axis=(2, 4)).astype(jnp.bfloat16)

    C1 = params["w1"].shape[-1]
    C2 = params["w2"].shape[-1]
    w1 = params["w1"].reshape(9 * Cin, C1).astype(jnp.bfloat16)        # HWIO -> (9*Cin, Cout)
    w2 = params["w2"].reshape(9 * C1, C2).astype(jnp.bfloat16)
    # Conv biases b1/b2 are intentionally NOT used: the batch-stat BatchNorm
    # right after each conv cancels any per-channel additive bias exactly
    # (the reference below keeps them and still matches).

    # conv1 (+ BN1 stats)
    y1, s1, q1 = conv3x3_fused(x, w1)
    scale1, shift1 = _bn_scale_shift(s1, q1, N * Hp * Wp,
                                     params["gamma1"], params["beta1"], eps)

    # BN1 + ReLU fused into conv2's prologue; conv2 (+ BN2 stats)
    y2, s2, q2 = conv3x3_fused(y1.reshape(N, Hp, Wp, C1), w2,
                               scale=scale1, shift=shift1)
    scale2, shift2 = _bn_scale_shift(s2, q2, N * Hp * Wp,
                                     params["gamma2"], params["beta2"], eps)

    # final BN2 + ReLU with fused channels-first output
    out = bn_relu_to_nchw(y2, scale2, shift2)                          # (N, C2, Hp*Wp) f32
    return out.reshape(N, C2, Hp, Wp)                                  # metadata-only


def init_params(key, in_channels, out_channels):
    k1, k2, k3, k4 = jax.random.split(key, 4)
    # Conv weights stored as (kh, kw, Cin, Cout) (HWIO).
    w1 = jax.random.normal(k1, (3, 3, in_channels, out_channels), jnp.float32) * 0.1
    b1 = jax.random.normal(k2, (out_channels,), jnp.float32) * 0.1
    w2 = jax.random.normal(k3, (3, 3, out_channels, out_channels), jnp.float32) * 0.1
    b2 = jax.random.normal(k4, (out_channels,), jnp.float32) * 0.1
    return {
        "w1": w1, "b1": b1,
        "gamma1": jnp.ones((out_channels,), jnp.float32),
        "beta1": jnp.zeros((out_channels,), jnp.float32),
        "w2": w2, "b2": b2,
        "gamma2": jnp.ones((out_channels,), jnp.float32),
        "beta2": jnp.zeros((out_channels,), jnp.float32),
    }


# ---------------------------------------------------------------------------
# Pure-JAX f32 reference (with biases — proves the bias-cancellation claim)
# ---------------------------------------------------------------------------
def reference_down(params, x_nchw, eps=1e-5):
    x = jnp.transpose(x_nchw, (0, 2, 3, 1)).astype(jnp.float32)
    N, H, W, C = x.shape
    x = x.reshape(N, H // 2, 2, W // 2, 2, C).max(axis=(2, 4))

    def conv(v, w, b):
        return lax.conv_general_dilated(
            v, w, (1, 1), "SAME",
            dimension_numbers=("NHWC", "HWIO", "NHWC")) + b

    def bnrelu(v, gamma, beta):
        mean = v.mean(axis=(0, 1, 2))
        var = v.var(axis=(0, 1, 2))
        return jnp.maximum((v - mean) / jnp.sqrt(var + eps) * gamma + beta, 0.0)

    v = conv(x, params["w1"], params["b1"])
    v = bnrelu(v, params["gamma1"], params["beta1"])
    v = conv(v, params["w2"], params["b2"])
    v = bnrelu(v, params["gamma2"], params["beta2"])
    return jnp.transpose(v, (0, 3, 1, 2))


if __name__ == "__main__":
    # Down(in_channels=4, out_channels=8): x (N=2, C=4, H=16, W=16) -> (2, 8, 8, 8)
    in_channels, out_channels = 4, 8
    key = jax.random.PRNGKey(0)
    k_x, k_p = jax.random.split(key)
    x = jax.random.normal(k_x, (2, in_channels, 16, 16), jnp.float32)   # NCHW
    params = init_params(k_p, in_channels, out_channels)

    fwd = jax.jit(functools.partial(down_forward, params))
    out = jax.block_until_ready(fwd(x))

    assert out.shape == (2, out_channels, 8, 8), out.shape
    assert bool(jnp.all(jnp.isfinite(out)))

    # Loose tolerance: the Pallas path uses bf16 activations/weights with f32
    # accumulation, the reference is pure f32 (and keeps the conv biases,
    # which the batch-stat BN cancels).
    ref = reference_down(params, x)
    np.testing.assert_allclose(np.asarray(out), np.asarray(ref), atol=0.2, rtol=0.2)

    print("KERNEL_OK")
</pallas_src>

<mosaic_0001>
module attributes {stable_mosaic.version = 11 : i64} {
  func.func @kernel(%arg0: i32, %arg1: memref<1x8x8x4xbf16, #tpu.memory_space<vmem>>, %arg2: memref<36x8xbf16, #tpu.memory_space<vmem>>, %arg3: memref<1x64x8xbf16, #tpu.memory_space<vmem>>, %arg4: memref<1x1x8xf32, #tpu.memory_space<vmem>>, %arg5: memref<1x1x8xf32, #tpu.memory_space<vmem>>, %arg6: memref<10x10x4xf32, #tpu.memory_space<vmem>>) attributes {dimension_semantics = [#tpu.dimension_semantics<parallel>], iteration_bounds = array<i64: 2>, scalar_prefetch = 0 : i64, scratch_operands = 1 : i64, tpu.core_type = #tpu.core_type<tc>, window_params = [{transform_indices = @transform_0, window_bounds = array<i64: 1, 8, 8, 4>}, {pipeline_mode = #tpu.pipeline_mode<synchronous>, transform_indices = @transform_1, window_bounds = array<i64: 36, 8>}, {transform_indices = @transform_2, window_bounds = array<i64: 1, 64, 8>}, {transform_indices = @transform_3, window_bounds = array<i64: 1, 1, 8>}, {transform_indices = @transform_4, window_bounds = array<i64: 1, 1, 8>}]} {
    %c0_i32 = arith.constant 0 : i32
    %0 = arith.cmpi eq, %arg0, %c0_i32 : i32
    %1 = arith.extui %0 : i1 to i32
    %c0_i32_0 = arith.constant 0 : i32
    %2 = arith.cmpi ne, %1, %c0_i32_0 : i32
    scf.if %2 {
      %cst_45 = arith.constant 0.000000e+00 : f32
      %49 = vector.broadcast %cst_45 : f32 to vector<1x10x4xf32>
      %c0_46 = arith.constant 0 : index
      %c0_47 = arith.constant 0 : index
      %c0_48 = arith.constant 0 : index
      %50 = vector.load %arg6[%c0_46, %c0_47, %c0_48] : memref<10x10x4xf32, #tpu.memory_space<vmem>>, vector<1x10x4xf32>
      tpu.vector_store %arg6[%c0_46, %c0_47, %c0_48], %49 {strides = array<i32>} : memref<10x10x4xf32, #tpu.memory_space<vmem>>, vector<1x10x4xf32>,
      %cst_49 = arith.constant 0.000000e+00 : f32
      %51 = vector.broadcast %cst_49 : f32 to vector<1x10x4xf32>
      %c9 = arith.constant 9 : index
      %c0_50 = arith.constant 0 : index
      %c0_51 = arith.constant 0 : index
      %52 = vector.load %arg6[%c9, %c0_50, %c0_51] : memref<10x10x4xf32, #tpu.memory_space<vmem>>, vector<1x10x4xf32>
      tpu.vector_store %arg6[%c9, %c0_50, %c0_51], %51 {strides = array<i32>} : memref<10x10x4xf32, #tpu.memory_space<vmem>>, vector<1x10x4xf32>,
      %cst_52 = arith.constant 0.000000e+00 : f32
      %53 = vector.broadcast %cst_52 : f32 to vector<10x1x4xf32>
      %c0_53 = arith.constant 0 : index
      %c0_54 = arith.constant 0 : index
      %c0_55 = arith.constant 0 : index
      %54 = vector.load %arg6[%c0_53, %c0_54, %c0_55] : memref<10x10x4xf32, #tpu.memory_space<vmem>>, vector<10x1x4xf32>
      tpu.vector_store %arg6[%c0_53, %c0_54, %c0_55], %53 {strides = array<i32>} : memref<10x10x4xf32, #tpu.memory_space<vmem>>, vector<10x1x4xf32>,
      %cst_56 = arith.constant 0.000000e+00 : f32
      %55 = vector.broadcast %cst_56 : f32 to vector<10x1x4xf32>
      %c0_57 = arith.constant 0 : index
      %c9_58 = arith.constant 9 : index
      %c0_59 = arith.constant 0 : index
      %56 = vector.load %arg6[%c0_57, %c9_58, %c0_59] : memref<10x10x4xf32, #tpu.memory_space<vmem>>, vector<10x1x4xf32>
      tpu.vector_store %arg6[%c0_57, %c9_58, %c0_59], %55 {strides = array<i32>} : memref<10x10x4xf32, #tpu.memory_space<vmem>>, vector<10x1x4xf32>,
    } else {
    }
    %c0 = arith.constant 0 : index
    %c0_1 = arith.constant 0 : index
    %c0_2 = arith.constant 0 : index
    %c0_3 = arith.constant 0 : index
    %3 = vector.load %arg1[%c0, %c0_1, %c0_2, %c0_3] : memref<1x8x8x4xbf16, #tpu.memory_space<vmem>>, vector<1x8x8x4xbf16>
    %4 = vector.shape_cast %3 : vector<1x8x8x4xbf16> to vector<8x8x4xbf16>
    %5 = arith.extf %4 : vector<8x8x4xbf16> to vector<8x8x4xf32>
    %c1 = arith.constant 1 : index
    %c1_4 = arith.constant 1 : index
    %c0_5 = arith.constant 0 : index
    %6 = vector.load %arg6[%c1, %c1_4, %c0_5] : memref<10x10x4xf32, #tpu.memory_space<vmem>>, vector<8x8x4xf32>
    tpu.vector_store %arg6[%c1, %c1_4, %c0_5], %5 {strides = array<i32>} : memref<10x10x4xf32, #tpu.memory_space<vmem>>, vector<8x8x4xf32>,
    %c0_6 = arith.constant 0 : index
    %c0_7 = arith.constant 0 : index
    %c0_8 = arith.constant 0 : index
    %7 = vector.load %arg6[%c0_6, %c0_7, %c0_8] : memref<10x10x4xf32, #tpu.memory_space<vmem>>, vector<8x8x4xf32>
    %8 = vector.shape_cast %7 : vector<8x8x4xf32> to vector<64x4xf32>
    %9 = arith.truncf %8 : vector<64x4xf32> to vector<64x4xbf16>
    %c0_9 = arith.constant 0 : index
    %c1_10 = arith.constant 1 : index
    %c0_11 = arith.constant 0 : index
    %10 = vector.load %arg6[%c0_9, %c1_10, %c0_11] : memref<10x10x4xf32, #tpu.memory_space<vmem>>, vector<8x8x4xf32>
    %11 = vector.shape_cast %10 : vector<8x8x4xf32> to vector<64x4xf32>
    %12 = arith.truncf %11 : vector<64x4xf32> to vector<64x4xbf16>
    %c0_12 = arith.constant 0 : index
    %c2 = arith.constant 2 : index
    %c0_13 = arith.constant 0 : index
    %13 = vector.load %arg6[%c0_12, %c2, %c0_13] : memref<10x10x4xf32, #tpu.memory_space<vmem>>, vector<8x8x4xf32>
    %14 = vector.shape_cast %13 : vector<8x8x4xf32> to vector<64x4xf32>
    %15 = arith.truncf %14 : vector<64x4xf32> to vector<64x4xbf16>
    %c1_14 = arith.constant 1 : index
    %c0_15 = arith.constant 0 : index
    %c0_16 = arith.constant 0 : index
    %16 = vector.load %arg6[%c1_14, %c0_15, %c0_16] : memref<10x10x4xf32, #tpu.memory_space<vmem>>, vector<8x8x4xf32>
    %17 = vector.shape_cast %16 : vector<8x8x4xf32> to vector<64x4xf32>
    %18 = arith.truncf %17 : vector<64x4xf32> to vector<64x4xbf16>
    %c1_17 = arith.constant 1 : index
    %c1_18 = arith.constant 1 : index
    %c0_19 = arith.constant 0 : index
    %19 = vector.load %arg6[%c1_17, %c1_18, %c0_19] : memref<10x10x4xf32, #tpu.memory_space<vmem>>, vector<8x8x4xf32>
    %20 = vector.shape_cast %19 : vector<8x8x4xf32> to vector<64x4xf32>
    %21 = arith.truncf %20 : vector<64x4xf32> to vector<64x4xbf16>
    %c1_20 = arith.constant 1 : index
    %c2_21 = arith.constant 2 : index
    %c0_22 = arith.constant 0 : index
    %22 = vector.load %arg6[%c1_20, %c2_21, %c0_22] : memref<10x10x4xf32, #tpu.memory_space<vmem>>, vector<8x8x4xf32>
    %23 = vector.shape_cast %22 : vector<8x8x4xf32> to vector<64x4xf32>
    %24 = arith.truncf %23 : vector<64x4xf32> to vector<64x4xbf16>
    %c2_23 = arith.constant 2 : index
    %c0_24 = arith.constant 0 : index
    %c0_25 = arith.constant 0 : index
    %25 = vector.load %arg6[%c2_23, %c0_24, %c0_25] : memref<10x10x4xf32, #tpu.memory_space<vmem>>, vector<8x8x4xf32>
    %26 = vector.shape_cast %25 : vector<8x8x4xf32> to vector<64x4xf32>
    %27 = arith.truncf %26 : vector<64x4xf32> to vector<64x4xbf16>
    %c2_26 = arith.constant 2 : index
    %c1_27 = arith.constant 1 : index
    %c0_28 = arith.constant 0 : index
    %28 = vector.load %arg6[%c2_26, %c1_27, %c0_28] : memref<10x10x4xf32, #tpu.memory_space<vmem>>, vector<8x8x4xf32>
    %29 = vector.shape_cast %28 : vector<8x8x4xf32> to vector<64x4xf32>
    %30 = arith.truncf %29 : vector<64x4xf32> to vector<64x4xbf16>
    %c2_29 = arith.constant 2 : index
    %c2_30 = arith.constant 2 : index
    %c0_31 = arith.constant 0 : index
    %31 = vector.load %arg6[%c2_29, %c2_30, %c0_31] : memref<10x10x4xf32, #tpu.memory_space<vmem>>, vector<8x8x4xf32>
    %32 = vector.shape_cast %31 : vector<8x8x4xf32> to vector<64x4xf32>
    %33 = arith.truncf %32 : vector<64x4xf32> to vector<64x4xbf16>
    %34 = tpu.concatenate %9, %12, %15, %18, %21, %24, %27, %30, %33 in 1 : vector<64x4xbf16>, vector<64x4xbf16>, vector<64x4xbf16>, vector<64x4xbf16>, vector<64x4xbf16>, vector<64x4xbf16>, vector<64x4xbf16>, vector<64x4xbf16>, vector<64x4xbf16> -> vector<64x36xbf16>
    %c0_32 = arith.constant 0 : index
    %c0_33 = arith.constant 0 : index
    %35 = vector.load %arg2[%c0_32, %c0_33] : memref<36x8xbf16, #tpu.memory_space<vmem>>, vector<36x8xbf16>
    %cst = arith.constant dense<0.000000e+00> : vector<64x8xf32>
    %36 = tpu.matmul %34, %35, %cst {dimension_numbers = #tpu.dot_dimension_numbers<[1], [0], [0], [1], [0, 0, 1, 1], [], []>} : vector<64x36xbf16>, vector<36x8xbf16>, vector<64x8xf32> -> vector<64x8xf32>
    %37 = vector.shape_cast %36 : vector<64x8xf32> to vector<1x64x8xf32>
    %38 = arith.truncf %37 : vector<1x64x8xf32> to vector<1x64x8xbf16>
    %c0_34 = arith.constant 0 : index
    %c0_35 = arith.constant 0 : index
    %c0_36 = arith.constant 0 : index
    %39 = vector.load %arg3[%c0_34, %c0_35, %c0_36] : memref<1x64x8xbf16, #tpu.memory_space<vmem>>, vector<1x64x8xbf16>
    tpu.vector_store %arg3[%c0_34, %c0_35, %c0_36], %38 {strides = array<i32>} : memref<1x64x8xbf16, #tpu.memory_space<vmem>>, vector<1x64x8xbf16>,
    %cst_37 = arith.constant dense<0.000000e+00> : vector<8xf32>
    %40 = vector.multi_reduction <add>, %36, %cst_37 [0] : vector<64x8xf32> to vector<8xf32>
    %41 = vector.shape_cast %40 : vector<8xf32> to vector<1x8xf32>
    %42 = vector.shape_cast %41 : vector<1x8xf32> to vector<1x1x8xf32>
    %c0_38 = arith.constant 0 : index
    %c0_39 = arith.constant 0 : index
    %c0_40 = arith.constant 0 : index
    %43 = vector.load %arg4[%c0_38, %c0_39, %c0_40] : memref<1x1x8xf32, #tpu.memory_space<vmem>>, vector<1x1x8xf32>
    tpu.vector_store %arg4[%c0_38, %c0_39, %c0_40], %42 {strides = array<i32>} : memref<1x1x8xf32, #tpu.memory_space<vmem>>, vector<1x1x8xf32>,
    %44 = arith.mulf %36, %36 : vector<64x8xf32>
    %cst_41 = arith.constant dense<0.000000e+00> : vector<8xf32>
    %45 = vector.multi_reduction <add>, %44, %cst_41 [0] : vector<64x8xf32> to vector<8xf32>
    %46 = vector.shape_cast %45 : vector<8xf32> to vector<1x8xf32>
    %47 = vector.shape_cast %46 : vector<1x8xf32> to vector<1x1x8xf32>
    %c0_42 = arith.constant 0 : index
    %c0_43 = arith.constant 0 : index
    %c0_44 = arith.constant 0 : index
    %48 = vector.load %arg5[%c0_42, %c0_43, %c0_44] : memref<1x1x8xf32, #tpu.memory_space<vmem>>, vector<1x1x8xf32>
    tpu.vector_store %arg5[%c0_42, %c0_43, %c0_44], %47 {strides = array<i32>} : memref<1x1x8xf32, #tpu.memory_space<vmem>>, vector<1x1x8xf32>,
    return
  }
  func.func @transform_0(%arg0: i32) -> (i32, i32, i32, i32) {
    %c0_i32 = arith.constant 0 : i32
    %c0_i32_0 = arith.constant 0 : i32
    %c0_i32_1 = arith.constant 0 : i32
    %c0_i32_2 = arith.constant 0 : i32
    return %arg0, %c0_i32, %c0_i32_0, %c0_i32_1 : i32, i32, i32, i32
  }
  func.func @transform_1(%arg0: i32) -> (i32, i32) {
    %c0_i32 = arith.constant 0 : i32
    %c0_i32_0 = arith.constant 0 : i32
    %c0_i32_1 = arith.constant 0 : i32
    return %c0_i32, %c0_i32_0 : i32, i32
  }
  func.func @transform_2(%arg0: i32) -> (i32, i32, i32) {
    %c0_i32 = arith.constant 0 : i32
    %c0_i32_0 = arith.constant 0 : i32
    %c0_i32_1 = arith.constant 0 : i32
    return %arg0, %c0_i32, %c0_i32_0 : i32, i32, i32
  }
  func.func @transform_3(%arg0: i32) -> (i32, i32, i32) {
    %c0_i32 = arith.constant 0 : i32
    %c0_i32_0 = arith.constant 0 : i32
    %c0_i32_1 = arith.constant 0 : i32
    return %arg0, %c0_i32, %c0_i32_0 : i32, i32, i32
  }
  func.func @transform_4(%arg0: i32) -> (i32, i32, i32) {
    %c0_i32 = arith.constant 0 : i32
    %c0_i32_0 = arith.constant 0 : i32
    %c0_i32_1 = arith.constant 0 : i32
    return %arg0, %c0_i32, %c0_i32_0 : i32, i32, i32
  }
}

module attributes {stable_mosaic.version = 11 : i64} {
  func.func @_bn_relu_to_nchw_kernel(%arg0: i32, %arg1: memref<1x64x8xbf16, #tpu.memory_space<vmem>>, %arg2: memref<1x8xf32, #tpu.memory_space<vmem>>, %arg3: memref<1x8xf32, #tpu.memory_space<vmem>>, %arg4: memref<1x8x64xf32, #tpu.memory_space<vmem>>) attributes {dimension_semantics = [#tpu.dimension_semantics<parallel>], iteration_bounds = array<i64: 2>, scalar_prefetch = 0 : i64, scratch_operands = 0 : i64, tpu.core_type = #tpu.core_type<tc>, window_params = [{transform_indices = @transform_0, window_bounds = array<i64: 1, 64, 8>}, {pipeline_mode = #tpu.pipeline_mode<synchronous>, transform_indices = @transform_1, window_bounds = array<i64: 1, 8>}, {pipeline_mode = #tpu.pipeline_mode<synchronous>, transform_indices = @transform_2, window_bounds = array<i64: 1, 8>}, {transform_indices = @transform_3, window_bounds = array<i64: 1, 8, 64>}]} {
    %c0 = arith.constant 0 : index
    %c0_0 = arith.constant 0 : index
    %c0_1 = arith.constant 0 : index
    %0 = vector.load %arg1[%c0, %c0_0, %c0_1] : memref<1x64x8xbf16, #tpu.memory_space<vmem>>, vector<1x64x8xbf16>
    %1 = vector.shape_cast %0 : vector<1x64x8xbf16> to vector<64x8xbf16>
    %2 = arith.extf %1 : vector<64x8xbf16> to vector<64x8xf32>
    %c0_2 = arith.constant 0 : index
    %c0_3 = arith.constant 0 : index
    %3 = vector.load %arg2[%c0_2, %c0_3] : memref<1x8xf32, #tpu.memory_space<vmem>>, vector<1x8xf32>
    %4 = vector.broadcast %3 : vector<1x8xf32> to vector<64x8xf32>
    %5 = arith.mulf %2, %4 : vector<64x8xf32>
    %c0_4 = arith.constant 0 : index
    %c0_5 = arith.constant 0 : index
    %6 = vector.load %arg3[%c0_4, %c0_5] : memref<1x8xf32, #tpu.memory_space<vmem>>, vector<1x8xf32>
    %7 = vector.broadcast %6 : vector<1x8xf32> to vector<64x8xf32>
    %8 = arith.addf %5, %7 : vector<64x8xf32>
    %cst = arith.constant 0.000000e+00 : f32
    %9 = vector.broadcast %cst : f32 to vector<64x8xf32>
    %10 = arith.maximumf %8, %9 : vector<64x8xf32>
    %11 = tpu.transpose %10, [1, 0] : vector<64x8xf32> -> vector<8x64xf32>
    %12 = vector.shape_cast %11 : vector<8x64xf32> to vector<1x8x64xf32>
    %c0_6 = arith.constant 0 : index
    %c0_7 = arith.constant 0 : index
    %c0_8 = arith.constant 0 : index
    %13 = vector.load %arg4[%c0_6, %c0_7, %c0_8] : memref<1x8x64xf32, #tpu.memory_space<vmem>>, vector<1x8x64xf32>
    tpu.vector_store %arg4[%c0_6, %c0_7, %c0_8], %12 {strides = array<i32>} : memref<1x8x64xf32, #tpu.memory_space<vmem>>, vector<1x8x64xf32>,
    return
  }
  func.func @transform_0(%arg0: i32) -> (i32, i32, i32) {
    %c0_i32 = arith.constant 0 : i32
    %c0_i32_0 = arith.constant 0 : i32
    %c0_i32_1 = arith.constant 0 : i32
    return %arg0, %c0_i32, %c0_i32_0 : i32, i32, i32
  }
  func.func @transform_1(%arg0: i32) -> (i32, i32) {
    %c0_i32 = arith.constant 0 : i32
    %c0_i32_0 = arith.constant 0 : i32
    %c0_i32_1 = arith.constant 0 : i32
    return %c0_i32, %c0_i32_0 : i32, i32
  }
  func.func @transform_2(%arg0: i32) -> (i32, i32) {
    %c0_i32 = arith.constant 0 : i32
    %c0_i32_0 = arith.constant 0 : i32
    %c0_i32_1 = arith.constant 0 : i32
    return %c0_i32, %c0_i32_0 : i32, i32
  }
  func.func @transform_3(%arg0: i32) -> (i32, i32, i32) {
    %c0_i32 = arith.constant 0 : i32
    %c0_i32_0 = arith.constant 0 : i32
    %c0_i32_1 = arith.constant 0 : i32
    return %arg0, %c0_i32, %c0_i32_0 : i32, i32, i32
  }
}

module attributes {stable_mosaic.version = 11 : i64} {
  func.func @kernel(%arg0: i32, %arg1: memref<1x8x8x8xbf16, #tpu.memory_space<vmem>>, %arg2: memref<1x8xf32, #tpu.memory_space<vmem>>, %arg3: memref<1x8xf32, #tpu.memory_space<vmem>>, %arg4: memref<72x8xbf16, #tpu.memory_space<vmem>>, %arg5: memref<1x64x8xbf16, #tpu.memory_space<vmem>>, %arg6: memref<1x1x8xf32, #tpu.memory_space<vmem>>, %arg7: memref<1x1x8xf32, #tpu.memory_space<vmem>>, %arg8: memref<10x10x8xf32, #tpu.memory_space<vmem>>) attributes {dimension_semantics = [#tpu.dimension_semantics<parallel>], iteration_bounds = array<i64: 2>, scalar_prefetch = 0 : i64, scratch_operands = 1 : i64, tpu.core_type = #tpu.core_type<tc>, window_params = [{transform_indices = @transform_0, window_bounds = array<i64: 1, 8, 8, 8>}, {pipeline_mode = #tpu.pipeline_mode<synchronous>, transform_indices = @transform_1, window_bounds = array<i64: 1, 8>}, {pipeline_mode = #tpu.pipeline_mode<synchronous>, transform_indices = @transform_2, window_bounds = array<i64: 1, 8>}, {pipeline_mode = #tpu.pipeline_mode<synchronous>, transform_indices = @transform_3, window_bounds = array<i64: 72, 8>}, {transform_indices = @transform_4, window_bounds = array<i64: 1, 64, 8>}, {transform_indices = @transform_5, window_bounds = array<i64: 1, 1, 8>}, {transform_indices = @transform_6, window_bounds = array<i64: 1, 1, 8>}]} {
    %c0_i32 = arith.constant 0 : i32
    %0 = arith.cmpi eq, %arg0, %c0_i32 : i32
    %1 = arith.extui %0 : i1 to i32
    %c0_i32_0 = arith.constant 0 : i32
    %2 = arith.cmpi ne, %1, %c0_i32_0 : i32
    scf.if %2 {
      %cst_50 = arith.constant 0.000000e+00 : f32
      %59 = vector.broadcast %cst_50 : f32 to vector<1x10x8xf32>
      %c0_51 = arith.constant 0 : index
      %c0_52 = arith.constant 0 : index
      %c0_53 = arith.constant 0 : index
      %60 = vector.load %arg8[%c0_51, %c0_52, %c0_53] : memref<10x10x8xf32, #tpu.memory_space<vmem>>, vector<1x10x8xf32>
      tpu.vector_store %arg8[%c0_51, %c0_52, %c0_53], %59 {strides = array<i32>} : memref<10x10x8xf32, #tpu.memory_space<vmem>>, vector<1x10x8xf32>,
      %cst_54 = arith.constant 0.000000e+00 : f32
      %61 = vector.broadcast %cst_54 : f32 to vector<1x10x8xf32>
      %c9 = arith.constant 9 : index
      %c0_55 = arith.constant 0 : index
      %c0_56 = arith.constant 0 : index
      %62 = vector.load %arg8[%c9, %c0_55, %c0_56] : memref<10x10x8xf32, #tpu.memory_space<vmem>>, vector<1x10x8xf32>
      tpu.vector_store %arg8[%c9, %c0_55, %c0_56], %61 {strides = array<i32>} : memref<10x10x8xf32, #tpu.memory_space<vmem>>, vector<1x10x8xf32>,
      %cst_57 = arith.constant 0.000000e+00 : f32
      %63 = vector.broadcast %cst_57 : f32 to vector<10x1x8xf32>
      %c0_58 = arith.constant 0 : index
      %c0_59 = arith.constant 0 : index
      %c0_60 = arith.constant 0 : index
      %64 = vector.load %arg8[%c0_58, %c0_59, %c0_60] : memref<10x10x8xf32, #tpu.memory_space<vmem>>, vector<10x1x8xf32>
      tpu.vector_store %arg8[%c0_58, %c0_59, %c0_60], %63 {strides = array<i32>} : memref<10x10x8xf32, #tpu.memory_space<vmem>>, vector<10x1x8xf32>,
      %cst_61 = arith.constant 0.000000e+00 : f32
      %65 = vector.broadcast %cst_61 : f32 to vector<10x1x8xf32>
      %c0_62 = arith.constant 0 : index
      %c9_63 = arith.constant 9 : index
      %c0_64 = arith.constant 0 : index
      %66 = vector.load %arg8[%c0_62, %c9_63, %c0_64] : memref<10x10x8xf32, #tpu.memory_space<vmem>>, vector<10x1x8xf32>
      tpu.vector_store %arg8[%c0_62, %c9_63, %c0_64], %65 {strides = array<i32>} : memref<10x10x8xf32, #tpu.memory_space<vmem>>, vector<10x1x8xf32>,
    } else {
    }
    %c0 = arith.constant 0 : index
    %c0_1 = arith.constant 0 : index
    %c0_2 = arith.constant 0 : index
    %c0_3 = arith.constant 0 : index
    %3 = vector.load %arg1[%c0, %c0_1, %c0_2, %c0_3] : memref<1x8x8x8xbf16, #tpu.memory_space<vmem>>, vector<1x8x8x8xbf16>
    %4 = vector.shape_cast %3 : vector<1x8x8x8xbf16> to vector<8x8x8xbf16>
    %5 = arith.extf %4 : vector<8x8x8xbf16> to vector<8x8x8xf32>
    %c0_4 = arith.constant 0 : index
    %c0_5 = arith.constant 0 : index
    %6 = vector.load %arg2[%c0_4, %c0_5] : memref<1x8xf32, #tpu.memory_space<vmem>>, vector<1x8xf32>
    %7 = vector.shape_cast %6 : vector<1x8xf32> to vector<1x1x8xf32>
    %8 = vector.broadcast %7 : vector<1x1x8xf32> to vector<8x8x8xf32>
    %9 = arith.mulf %5, %8 : vector<8x8x8xf32>
    %c0_6 = arith.constant 0 : index
    %c0_7 = arith.constant 0 : index
    %10 = vector.load %arg3[%c0_6, %c0_7] : memref<1x8xf32, #tpu.memory_space<vmem>>, vector<1x8xf32>
    %11 = vector.shape_cast %10 : vector<1x8xf32> to vector<1x1x8xf32>
    %12 = vector.broadcast %11 : vector<1x1x8xf32> to vector<8x8x8xf32>
    %13 = arith.addf %9, %12 : vector<8x8x8xf32>
    %cst = arith.constant 0.000000e+00 : f32
    %14 = vector.broadcast %cst : f32 to vector<8x8x8xf32>
    %15 = arith.maximumf %13, %14 : vector<8x8x8xf32>
    %c1 = arith.constant 1 : index
    %c1_8 = arith.constant 1 : index
    %c0_9 = arith.constant 0 : index
    %16 = vector.load %arg8[%c1, %c1_8, %c0_9] : memref<10x10x8xf32, #tpu.memory_space<vmem>>, vector<8x8x8xf32>
    tpu.vector_store %arg8[%c1, %c1_8, %c0_9], %15 {strides = array<i32>} : memref<10x10x8xf32, #tpu.memory_space<vmem>>, vector<8x8x8xf32>,
    %c0_10 = arith.constant 0 : index
    %c0_11 = arith.constant 0 : index
    %c0_12 = arith.constant 0 : index
    %17 = vector.load %arg8[%c0_10, %c0_11, %c0_12] : memref<10x10x8xf32, #tpu.memory_space<vmem>>, vector<8x8x8xf32>
    %18 = vector.shape_cast %17 : vector<8x8x8xf32> to vector<64x8xf32>
    %19 = arith.truncf %18 : vector<64x8xf32> to vector<64x8xbf16>
    %c0_13 = arith.constant 0 : index
    %c1_14 = arith.constant 1 : index
    %c0_15 = arith.constant 0 : index
    %20 = vector.load %arg8[%c0_13, %c1_14, %c0_15] : memref<10x10x8xf32, #tpu.memory_space<vmem>>, vector<8x8x8xf32>
    %21 = vector.shape_cast %20 : vector<8x8x8xf32> to vector<64x8xf32>
    %22 = arith.truncf %21 : vector<64x8xf32> to vector<64x8xbf16>
    %c0_16 = arith.constant 0 : index
    %c2 = arith.constant 2 : index
    %c0_17 = arith.constant 0 : index
    %23 = vector.load %arg8[%c0_16, %c2, %c0_17] : memref<10x10x8xf32, #tpu.memory_space<vmem>>, vector<8x8x8xf32>
    %24 = vector.shape_cast %23 : vector<8x8x8xf32> to vector<64x8xf32>
    %25 = arith.truncf %24 : vector<64x8xf32> to vector<64x8xbf16>
    %c1_18 = arith.constant 1 : index
    %c0_19 = arith.constant 0 : index
    %c0_20 = arith.constant 0 : index
    %26 = vector.load %arg8[%c1_18, %c0_19, %c0_20] : memref<10x10x8xf32, #tpu.memory_space<vmem>>, vector<8x8x8xf32>
    %27 = vector.shape_cast %26 : vector<8x8x8xf32> to vector<64x8xf32>
    %28 = arith.truncf %27 : vector<64x8xf32> to vector<64x8xbf16>
    %c1_21 = arith.constant 1 : index
    %c1_22 = arith.constant 1 : index
    %c0_23 = arith.constant 0 : index
    %29 = vector.load %arg8[%c1_21, %c1_22, %c0_23] : memref<10x10x8xf32, #tpu.memory_space<vmem>>, vector<8x8x8xf32>
    %30 = vector.shape_cast %29 : vector<8x8x8xf32> to vector<64x8xf32>
    %31 = arith.truncf %30 : vector<64x8xf32> to vector<64x8xbf16>
    %c1_24 = arith.constant 1 : index
    %c2_25 = arith.constant 2 : index
    %c0_26 = arith.constant 0 : index
    %32 = vector.load %arg8[%c1_24, %c2_25, %c0_26] : memref<10x10x8xf32, #tpu.memory_space<vmem>>, vector<8x8x8xf32>
    %33 = vector.shape_cast %32 : vector<8x8x8xf32> to vector<64x8xf32>
    %34 = arith.truncf %33 : vector<64x8xf32> to vector<64x8xbf16>
    %c2_27 = arith.constant 2 : index
    %c0_28 = arith.constant 0 : index
    %c0_29 = arith.constant 0 : index
    %35 = vector.load %arg8[%c2_27, %c0_28, %c0_29] : memref<10x10x8xf32, #tpu.memory_space<vmem>>, vector<8x8x8xf32>
    %36 = vector.shape_cast %35 : vector<8x8x8xf32> to vector<64x8xf32>
    %37 = arith.truncf %36 : vector<64x8xf32> to vector<64x8xbf16>
    %c2_30 = arith.constant 2 : index
    %c1_31 = arith.constant 1 : index
    %c0_32 = arith.constant 0 : index
    %38 = vector.load %arg8[%c2_30, %c1_31, %c0_32] : memref<10x10x8xf32, #tpu.memory_space<vmem>>, vector<8x8x8xf32>
    %39 = vector.shape_cast %38 : vector<8x8x8xf32> to vector<64x8xf32>
    %40 = arith.truncf %39 : vector<64x8xf32> to vector<64x8xbf16>
    %c2_33 = arith.constant 2 : index
    %c2_34 = arith.constant 2 : index
    %c0_35 = arith.constant 0 : index
    %41 = vector.load %arg8[%c2_33, %c2_34, %c0_35] : memref<10x10x8xf32, #tpu.memory_space<vmem>>, vector<8x8x8xf32>
    %42 = vector.shape_cast %41 : vector<8x8x8xf32> to vector<64x8xf32>
    %43 = arith.truncf %42 : vector<64x8xf32> to vector<64x8xbf16>
    %44 = tpu.concatenate %19, %22, %25, %28, %31, %34, %37, %40, %43 in 1 : vector<64x8xbf16>, vector<64x8xbf16>, vector<64x8xbf16>, vector<64x8xbf16>, vector<64x8xbf16>, vector<64x8xbf16>, vector<64x8xbf16>, vector<64x8xbf16>, vector<64x8xbf16> -> vector<64x72xbf16>
    %c0_36 = arith.constant 0 : index
    %c0_37 = arith.constant 0 : index
    %45 = vector.load %arg4[%c0_36, %c0_37] : memref<72x8xbf16, #tpu.memory_space<vmem>>, vector<72x8xbf16>
    %cst_38 = arith.constant dense<0.000000e+00> : vector<64x8xf32>
    %46 = tpu.matmul %44, %45, %cst_38 {dimension_numbers = #tpu.dot_dimension_numbers<[1], [0], [0], [1], [0, 0, 1, 1], [], []>} : vector<64x72xbf16>, vector<72x8xbf16>, vector<64x8xf32> -> vector<64x8xf32>
    %47 = vector.shape_cast %46 : vector<64x8xf32> to vector<1x64x8xf32>
    %48 = arith.truncf %47 : vector<1x64x8xf32> to vector<1x64x8xbf16>
    %c0_39 = arith.constant 0 : index
    %c0_40 = arith.constant 0 : index
    %c0_41 = arith.constant 0 : index
    %49 = vector.load %arg5[%c0_39, %c0_40, %c0_41] : memref<1x64x8xbf16, #tpu.memory_space<vmem>>, vector<1x64x8xbf16>
    tpu.vector_store %arg5[%c0_39, %c0_40, %c0_41], %48 {strides = array<i32>} : memref<1x64x8xbf16, #tpu.memory_space<vmem>>, vector<1x64x8xbf16>,
    %cst_42 = arith.constant dense<0.000000e+00> : vector<8xf32>
    %50 = vector.multi_reduction <add>, %46, %cst_42 [0] : vector<64x8xf32> to vector<8xf32>
    %51 = vector.shape_cast %50 : vector<8xf32> to vector<1x8xf32>
    %52 = vector.shape_cast %51 : vector<1x8xf32> to vector<1x1x8xf32>
    %c0_43 = arith.constant 0 : index
    %c0_44 = arith.constant 0 : index
    %c0_45 = arith.constant 0 : index
    %53 = vector.load %arg6[%c0_43, %c0_44, %c0_45] : memref<1x1x8xf32, #tpu.memory_space<vmem>>, vector<1x1x8xf32>
    tpu.vector_store %arg6[%c0_43, %c0_44, %c0_45], %52 {strides = array<i32>} : memref<1x1x8xf32, #tpu.memory_space<vmem>>, vector<1x1x8xf32>,
    %54 = arith.mulf %46, %46 : vector<64x8xf32>
    %cst_46 = arith.constant dense<0.000000e+00> : vector<8xf32>
    %55 = vector.multi_reduction <add>, %54, %cst_46 [0] : vector<64x8xf32> to vector<8xf32>
    %56 = vector.shape_cast %55 : vector<8xf32> to vector<1x8xf32>
    %57 = vector.shape_cast %56 : vector<1x8xf32> to vector<1x1x8xf32>
    %c0_47 = arith.constant 0 : index
    %c0_48 = arith.constant 0 : index
    %c0_49 = arith.constant 0 : index
    %58 = vector.load %arg7[%c0_47, %c0_48, %c0_49] : memref<1x1x8xf32, #tpu.memory_space<vmem>>, vector<1x1x8xf32>
    tpu.vector_store %arg7[%c0_47, %c0_48, %c0_49], %57 {strides = array<i32>} : memref<1x1x8xf32, #tpu.memory_space<vmem>>, vector<1x1x8xf32>,
    return
  }
  func.func @transform_0(%arg0: i32) -> (i32, i32, i32, i32) {
    %c0_i32 = arith.constant 0 : i32
    %c0_i32_0 = arith.constant 0 : i32
    %c0_i32_1 = arith.constant 0 : i32
    %c0_i32_2 = arith.constant 0 : i32
    return %arg0, %c0_i32, %c0_i32_0, %c0_i32_1 : i32, i32, i32, i32
  }
  func.func @transform_1(%arg0: i32) -> (i32, i32) {
    %c0_i32 = arith.constant 0 : i32
    %c0_i32_0 = arith.constant 0 : i32
    %c0_i32_1 = arith.constant 0 : i32
    return %c0_i32, %c0_i32_0 : i32, i32
  }
  func.func @transform_2(%arg0: i32) -> (i32, i32) {
    %c0_i32 = arith.constant 0 : i32
    %c0_i32_0 = arith.constant 0 : i32
    %c0_i32_1 = arith.constant 0 : i32
    return %c0_i32, %c0_i32_0 : i32, i32
  }
  func.func @transform_3(%arg0: i32) -> (i32, i32) {
    %c0_i32 = arith.constant 0 : i32
    %c0_i32_0 = arith.constant 0 : i32
    %c0_i32_1 = arith.constant 0 : i32
    return %c0_i32, %c0_i32_0 : i32, i32
  }
  func.func @transform_4(%arg0: i32) -> (i32, i32, i32) {
    %c0_i32 = arith.constant 0 : i32
    %c0_i32_0 = arith.constant 0 : i32
    %c0_i32_1 = arith.constant 0 : i32
    return %arg0, %c0_i32, %c0_i32_0 : i32, i32, i32
  }
  func.func @transform_5(%arg0: i32) -> (i32, i32, i32) {
    %c0_i32 = arith.constant 0 : i32
    %c0_i32_0 = arith.constant 0 : i32
    %c0_i32_1 = arith.constant 0 : i32
    return %arg0, %c0_i32, %c0_i32_0 : i32, i32, i32
  }
  func.func @transform_6(%arg0: i32) -> (i32, i32, i32) {
    %c0_i32 = arith.constant 0 : i32
    %c0_i32_0 = arith.constant 0 : i32
    %c0_i32_1 = arith.constant 0 : i32
    return %arg0, %c0_i32, %c0_i32_0 : i32, i32, i32
  }
}

</mosaic_0001>

<bundles_post_ra>
// kernel: down_forward.5
= control target key start
LH: loop header
LB: loop body
LE: loop exit
PB: predicated region body
PF: predicated region fallthrough
CT: control target
= control target key end

     0   :  { %s379_s12 = smov 0   ;;  %s406_s0 = inlined_call_operand.vmem [shape: bf16[2,64,8], index: 0, kind: input, shape index: {}]   ;;  %s407_s1 = inlined_call_operand.vmem [shape: f32[1,8], index: 1, kind: input, shape index: {}]   ;;  %s408_s2 = inlined_call_operand.vmem [shape: f32[1,8], index: 2, kind: input, shape index: {}]   ;;  %s409_s3 = inlined_call_operand.vmem [shape: f32[2,8,64], index: 3, kind: output, shape index: {}]  }
   0x1 LB: > { %s310_s13 = sadd.s32 4294967295, %s357_s12   ;;  %p314_p0 = scmp.ge.s32.totalorder %s357_s12, 1  ;;  %s357_s12 = sphi %s379_s12, %s13_s12  }
   0x2   : > { %p137_p1 = scmp.lt.s32.totalorder %s357_s12, 3 }
   0x4   : > { %p138_p2 = pnand %p314_p0, %p137_p1 }
   0x5   : > { %p160_p3 = scmp.lt.s32.totalorder (!%p138_p2), %s310_s13, 1  ;;  %v318_v1 = vld [vmem:[%s407_s1] ss:$0 sm:$0xff] (!%p138_p2)  ;;  %vm255_vm0 = vcmask (!%p138_p2), 523264  }
   0x6   : > { %141 = sbr.rel (%p138_p2) target bundleno = 155 (0x9b), region = 32  ;;  %v319_v6 = vld [vmem:[%s408_s2] ss:$0 sm:$0xff] (!%p138_p2) }
   0xd   : > { %s411_s13 = smov (!%p160_p3, %s310_s13), 1 }
   0xe   : > { %s322_s14 = sshll.u32 %s411_s13, 5  ;;  %s317_s22 = sshll.u32 %s411_s13, 3 }
   0xf   : > { %s164_s17 = scalar_lea.vmem %s406_s0, %s322_s14  ;;  %s168_s25 = scalar_lea.vmem %s409_s3, %s317_s22 }
  0x10   : > { %v324_v0 = vld [vmem:[%s164_s17] sm:$0xff]   ;;  %v339_v2 = vld [vmem:[%s164_s17 + $0x8] sm:$0xff]   ;;  %v340_v13 = vld [vmem:[%s164_s17 + $0x10] sm:$0xff]  }
  0x11   : > { %v325_v3 = vunpack.c.l.bf16 %v324_v0  ;;  %v326_v4 = vunpack.c.h.bf16 %v324_v0  ;;  %v329_v5 = vunpack.c.l.bf16 %v339_v2  ;;  %v330_v12 = vunpack.c.h.bf16 %v339_v2  ;;  %v341_v23 = vld [vmem:[%s164_s17 + $0x18] sm:$0xff]  }
  0x12   : > { %v333_v18 = vunpack.c.l.bf16 %v340_v13  ;;  %v334_v22 = vunpack.c.h.bf16 %v340_v13  ;;  %v337_v27 = vunpack.c.l.bf16 %v341_v23  ;;  %v338_v31 = vunpack.c.h.bf16 %v341_v23 }
  0x13   : > { %v192_v7 = vmul.f32 %v325_v3, %v318_v1  ;;  %v193_v8 = vmul.f32 %v326_v4, %v318_v1  ;;  %v194_v11 = vmul.f32 %v329_v5, %v318_v1  ;;  %v195_v17 = vmul.f32 %v330_v12, %v318_v1 }
  0x14   : > { %v196_v21 = vmul.f32 %v333_v18, %v318_v1  ;;  %v197_v26 = vmul.f32 %v334_v22, %v318_v1  ;;  %v198_v30 = vmul.f32 %v337_v27, %v318_v1  ;;  %v199_v34 = vmul.f32 %v338_v31, %v318_v1 }
  0x15   : > { %v207_v9 = vadd.f32 %v319_v6, %v192_v7  ;;  %v208_v10 = vadd.f32 %v319_v6, %v193_v8  ;;  %v209_v16 = vadd.f32 %v319_v6, %v194_v11  ;;  %v210_v20 = vadd.f32 %v319_v6, %v195_v17 }
  0x16   : > { %v211_v25 = vadd.f32 %v319_v6, %v196_v21  ;;  %v212_v29 = vadd.f32 %v319_v6, %v197_v26  ;;  %v213_v33 = vadd.f32 %v319_v6, %v198_v30  ;;  %v214_v36 = vadd.f32 %v319_v6, %v199_v34 }
  0x17   : > { %v215_v14 = vmax.f32 %v207_v9, 0.0  ;;  %v216_v15 = vmax.f32 %v208_v10, 0.0  ;;  %v217_v19 = vmax.f32 %v209_v16, 0.0  ;;  %v218_v24 = vmax.f32 %v210_v20, 0.0 }
  0x18   : > { %v219_v28 = vmax.f32 %v211_v25, 0.0  ;;  %v220_v32 = vmax.f32 %v212_v29, 0.0  ;;  %v221_v35 = vmax.f32 %v213_v33, 0.0  ;;  %v222_v37 = vmax.f32 %v214_v36, 0.0 }
  0x19   : > { %223 = vxpose.xlu0.b32.start [1/8] (short) (narrow) %v215_v14, 8 }
  0x1d   : > { %224 = vxpose.xlu0.b32.cont [2/8] (short) (narrow) %v216_v15, 8 }
  0x21   : > { %225 = vxpose.xlu0.b32.cont [3/8] (short) (narrow) %v217_v19, 8 }
  0x25   : > { %226 = vxpose.xlu0.b32.cont [4/8] (short) (narrow) %v218_v24, 8 }
  0x29   : > { %227 = vxpose.xlu0.b32.cont [5/8] (short) (narrow) %v219_v28, 8 }
  0x2d   : > { %228 = vxpose.xlu0.b32.cont [6/8] (short) (narrow) %v220_v32, 8 }
  0x31   : > { %229 = vxpose.xlu0.b32.cont [7/8] (short) (narrow) %v221_v35, 8 }
  0x35   : > { %230 = vxpose.xlu0.b32.end [8/8] (short) (narrow) %v222_v37, 8 }
  0x99   : > { %v239_v38 = vpop.trf.xlu0 }
  0x9a   : > { %256 = vst.msk [vmem:[%s168_s25] sm:$0xff] %vm255_vm0, %v239_v38 }
  0x9b PF: > { %s13_s12 = sadd.s32 1, %s357_s12  }
  0x9c   : > { %p10_p4 = scmp.ge.s32.totalorder %s13_s12, 4  }
  0x9e   :  { %12 = sbr.rel (!%p10_p4) target bundleno = 1 (0x1), region = 62 }

// kernel: down_forward.3
= control target key start
LH: loop header
LB: loop body
LE: loop exit
PB: predicated region body
PF: predicated region fallthrough
CT: control target
= control target key end

     0   :  { %s998_s15 = smov 0   ;;  %s1197_s0 = inlined_call_operand.vmem [shape: bf16[2,8,8,4], index: 0, kind: input, shape index: {}]   ;;  %s1198_s1 = inlined_call_operand.vmem [shape: bf16[36,8], index: 1, kind: input, shape index: {}]   ;;  %s1199_s2 = inlined_call_operand.vmem [shape: bf16[2,64,8], index: 2, kind: output, shape index: {0}]   ;;  %s1200_s3 = inlined_call_operand.vmem [shape: f32[2,1,8], index: 3, kind: output, shape index: {1}]   ;;  %s1201_s4 = inlined_call_operand.vmem [shape: f32[2,1,8], index: 4, kind: output, shape index: {2}]  }
   0x1 LB: > { %s851_s16 = sadd.s32 4294967295, %s962_s15   ;;  %p855_p0 = scmp.ge.s32.totalorder %s962_s15, 1  ;;  %s962_s15 = sphi %s998_s15, %s15_s15  }
   0x2   : > { %p167_p1 = scmp.lt.s32.totalorder %s962_s15, 3 }
   0x4   : > { %p168_p2 = pnand %p855_p0, %p167_p1 }
   0x5   : > { %p199_p3 = scmp.lt.s32.totalorder (!%p168_p2), %s851_s16, 1  ;;  %p860_p4 = scmp.ne.s32.totalorder (!%p168_p2), %s851_s16, 0 }
   0x6   : > { %171 = sbr.rel (%p168_p2) target bundleno = 455 (0x1c7), region = 28 }
   0xd   : > { %s1006_s17 = scalar_select %p199_p3, %s851_s16, 1 }
   0xe   : > { %219 = sbr.rel (%p860_p4) target bundleno = 27 (0x1b), region = 32  ;;  %vm220_vm0 = vcmask (!%p860_p4), 31744   ;;  %vm222_vm1 = vcmask (!%p860_p4), 25600   ;;  %vm227_vm2 = vcmask (!%p860_p4), 24576   ;;  %v964_v0 = vmov (!%p860_p4), 0.0  }
   0xf   : > { %s878_s18 = sshll.u32 %s1006_s17, 5  ;;  %s211_s21 = scalar_lea.vmem %s1200_s3, %s1006_s17  ;;  %221 = vst.msk [vmem:[#allocation2] sm:$0xff] (!%p860_p4), %vm220_vm0, %v964_v0  ;;  %225 = vst.msk [vmem:[#allocation2 + $0x90] sm:$0xff] (!%p860_p4), %vm220_vm0, %v964_v0 }
  0x10   : > { %s1016_s24 = scalar_lea.vmem %s1197_s0, %s878_s18  ;;  %s1021_s27 = scalar_lea.vmem %s1199_s2, %s878_s18  ;;  %223 = vst.msk [vmem:[#allocation2 + $0x8] sm:$0x3] (!%p860_p4), %vm222_vm1, %v964_v0  ;;  %226 = vst.msk [vmem:[#allocation2 + $0x98] sm:$0x3] (!%p860_p4), %vm222_vm1, %v964_v0 }
  0x11   : > { %s214_s30 = scalar_lea.vmem %s1201_s4, %s1006_s17  ;;  %229 = vst.msk [vmem:[#allocation2 + $0x10] sm:$0x1] (!%p860_p4), %vm227_vm2, %v964_v0  ;;  %230 = vst.msk [vmem:[#allocation2 + $0x20] sm:$0x1] (!%p860_p4), %vm227_vm2, %v964_v0 }
  0x12   : > { %231 = vst.msk [vmem:[#allocation2 + $0x30] sm:$0x1] (!%p860_p4), %vm227_vm2, %v964_v0  ;;  %232 = vst.msk [vmem:[#allocation2 + $0x40] sm:$0x1] (!%p860_p4), %vm227_vm2, %v964_v0 }
  0x13   : > { %233 = vst.msk [vmem:[#allocation2 + $0x50] sm:$0x1] (!%p860_p4), %vm227_vm2, %v964_v0  ;;  %234 = vst.msk [vmem:[#allocation2 + $0x60] sm:$0x1] (!%p860_p4), %vm227_vm2, %v964_v0 }
  0x14   : > { %235 = vst.msk [vmem:[#allocation2 + $0x70] sm:$0x1] (!%p860_p4), %vm227_vm2, %v964_v0  ;;  %236 = vst.msk [vmem:[#allocation2 + $0x80] sm:$0x1] (!%p860_p4), %vm227_vm2, %v964_v0 }
  0x15   : > { %239 = vst.msk [vmem:[#allocation2 + $0x19] sm:$0x1] %vm227_vm2, %v964_v0  ;;  %240 = vst.msk [vmem:[#allocation2 + $0x29] sm:$0x1] %vm227_vm2, %v964_v0 }
  0x16   : > { %241 = vst.msk [vmem:[#allocation2 + $0x39] sm:$0x1] %vm227_vm2, %v964_v0  ;;  %242 = vst.msk [vmem:[#allocation2 + $0x49] sm:$0x1] %vm227_vm2, %v964_v0 }
  0x17   : > { %243 = vst.msk [vmem:[#allocation2 + $0x59] sm:$0x1] %vm227_vm2, %v964_v0  ;;  %244 = vst.msk [vmem:[#allocation2 + $0x69] sm:$0x1] %vm227_vm2, %v964_v0 }
  0x18   : > { %245 = vst.msk [vmem:[#allocation2 + $0x79] sm:$0x1] %vm227_vm2, %v964_v0  ;;  %246 = vst.msk [vmem:[#allocation2 + $0x89] sm:$0x1] %vm227_vm2, %v964_v0 }
  0x19   : > { %228 = vst.msk [vmem:[#allocation2] sm:$0x1] %vm227_vm2, %v964_v0  ;;  %237 = vst.msk [vmem:[#allocation2 + $0x90] sm:$0x1] %vm227_vm2, %v964_v0 }
  0x1a   : > { %238 = vst.msk [vmem:[#allocation2 + $0x9] sm:$0x1] %vm227_vm2, %v964_v0  ;;  %247 = vst.msk [vmem:[#allocation2 + $0x99] sm:$0x1] %vm227_vm2, %v964_v0 }
  0x1b PF: > { %v889_v1 = vld [vmem:[%s1016_s24] sm:$0xff]   ;;  %vm265_vm3 = vcmask 31744   ;;  %v904_v4 = vld [vmem:[%s1016_s24 + $0x8] sm:$0xff]   ;;  %v905_v5 = vld [vmem:[%s1016_s24 + $0x10] sm:$0xff]   ;;  %s965_s5 = smov 8   ;;  %s966_s6 = smov 4  }
  0x1c   : > { %v890_v2 = vunpack.c.l.bf16 %v889_v1  ;;  %v891_v3 = vunpack.c.h.bf16 %v889_v1  ;;  %v906_v6 = vld [vmem:[%s1016_s24 + $0x18] sm:$0xff]   ;;  %v894_v7 = vunpack.c.l.bf16 %v904_v4  ;;  %v895_v8 = vunpack.c.h.bf16 %v904_v4  ;;  %v953_v32 = vld [vmem:[%s1198_s1] sm:$0xff]   ;;  %s967_s9 = smov 12   ;;  %v954_v36 = vld [vmem:[%s1198_s1 + $0x8] sm:$0xff]   ;;  %s968_s12 = smov 16  }
  0x1d   : > { %v898_v9 = vunpack.c.l.bf16 %v905_v5  ;;  %v899_v10 = vunpack.c.h.bf16 %v905_v5  ;;  %v902_v11 = vunpack.c.l.bf16 %v906_v6  ;;  %v903_v12 = vunpack.c.h.bf16 %v906_v6  ;;  %v286_v14 = vld [vmem:[#allocation2 + $0x1] sm:$0xff]  ;;  %914 = vmatprep.subr.bf16.mxu0 %v953_v32  ;;  %928 = vmatprep.subr.bf16.mxu1 %v953_v32  ;;  %v955_v40 = vld [vmem:[%s1198_s1 + $0x10] ss:$0 sps:$4 sm:$0x33]   ;;  %s969_s16 = smov 20   ;;  %s970_s18 = smov 24  }
  0x1e   : > { %266 = vst.msk [vmem:[#allocation2 + $0x11] sm:$0xff] %vm265_vm3, %v890_v2  ;;  %267 = vst.msk [vmem:[#allocation2 + $0x21] sm:$0xff] %vm265_vm3, %v891_v3  ;;  %915 = vmatpush3.bf16.msra.mxu0 %v953_v32  ;;  %931 = vmatpush3.bf16.msra.mxu1 %v953_v32  ;;  %vm583_vm4 = vcmask 1041408   ;;  %s971_s19 = smov 28   ;;  %s972_s20 = smov 32   ;;  %v366_v4 = vld [vmem:[#allocation2 + $0x91] sm:$0xff] }
  0x1f   : > { %268 = vst.msk [vmem:[#allocation2 + $0x31] sm:$0xff] %vm265_vm3, %v894_v7  ;;  %269 = vst.msk [vmem:[#allocation2 + $0x41] sm:$0xff] %vm265_vm3, %v895_v8  ;;  %916 = vmatprep.subr.bf16.mxu0 %v954_v36  ;;  %929 = vmatprep.subr.bf16.mxu1 %v954_v36  ;;  %v585_v43 = vsel %vm583_vm4, %v955_v40, 0  ;;  %vm491_vm5 = vcmask 64512   ;;  %vm500_vm6 = vcmask 97280   ;;  %vm509_vm7 = vcmask 130048  }
  0x20   : > { %270 = vst.msk [vmem:[#allocation2 + $0x51] sm:$0xff] %vm265_vm3, %v898_v9  ;;  %271 = vst.msk [vmem:[#allocation2 + $0x61] sm:$0xff] %vm265_vm3, %v899_v10  ;;  %v354_v1 = vld [vmem:[#allocation2 + $0x90] sm:$0xff]  ;;  %vm518_vm8 = vcmask 162816   ;;  %vm527_vm9 = vcmask 195584   ;;  %vm536_vm10 = vcmask 228352  }
  0x21   : > { %272 = vst.msk [vmem:[#allocation2 + $0x71] sm:$0xff] %vm265_vm3, %v902_v11  ;;  %273 = vst.msk [vmem:[#allocation2 + $0x81] sm:$0xff] %vm265_vm3, %v903_v12  ;;  %v298_v13 = vld [vmem:[#allocation2 + $0x2] sm:$0xff]  ;;  %v378_v6 = vld [vmem:[#allocation2 + $0x92] sm:$0xff]  ;;  %vm545_vm11 = vcmask 261120   ;;  %vm574_vm12 = vcmask 293888  }
  0x22   : > { %917 = vmatpush3.bf16.msra.mxu0 %v954_v36  ;;  %932 = vmatpush3.bf16.msra.mxu1 %v954_v36  ;;  %vm684_vm13 = vcmask 60416   ;;  %vm714_vm14 = vcmask 57344  }
  0x23   : > { %934 = vmatprep.subr.msk.bf16.mxu0 %vm583_vm4, %v955_v40  ;;  %935 = vmatprep.subr.msk.bf16.mxu1 %vm583_vm4, %v955_v40 }
  0x25   : > { %v299_v15 = vld [vmem:[#allocation2 + $0x12] sm:$0xff]  ;;  %v300_v17 = vld [vmem:[#allocation2 + $0x22] sm:$0xff] }
  0x26   : > { %v287_v16 = vld [vmem:[#allocation2 + $0x11] sm:$0xff]  ;;  %v306_v18 = vpack.c.bf16 %v299_v15, %v298_v13  ;;  %v288_v21 = vld [vmem:[#allocation2 + $0x21] sm:$0xff]  ;;  %v342_v38 = vpack.c.bf16 %v300_v17, %v299_v15  ;;  %919 = vmatpush3.bf16.msra.mxu0 %v585_v43  ;;  %933 = vmatpush3.bf16.msra.mxu1 %v585_v43 }
  0x27   : > { %v294_v19 = vpack.c.bf16 %v287_v16, %v286_v14  ;;  %v301_v20 = vld [vmem:[#allocation2 + $0x32] sm:$0xff]  ;;  %v313_v26 = vld [vmem:[#allocation2 + $0x40] sm:$0xff]  ;;  %v330_v34 = vpack.c.bf16 %v288_v21, %v287_v16 }
  0x28   : > { %v289_v22 = vld [vmem:[#allocation2 + $0x31] sm:$0xff]  ;;  %399 = vrot.lane.b32.xlu1 %v306_v18, %s965_s5  ;;  %v307_v23 = vpack.c.bf16 %v301_v20, %v300_v17  ;;  %v311_v28 = vld [vmem:[#allocation2 + $0x20] sm:$0xff] }
  0x29   : > { %387 = vrot.lane.b32.xlu0 %v294_v19, %s966_s6  ;;  %v295_v24 = vpack.c.bf16 %v289_v22, %v288_v21  ;;  %v312_v25 = vld [vmem:[#allocation2 + $0x30] sm:$0xff]  ;;  %v325_v31 = vld [vmem:[#allocation2 + $0x41] sm:$0xff] }
  0x2a   : > { %v1061_v27 = vld [vmem:[#allocation2 + $0x10] sm:$0xff]  ;;  %v319_v29 = vpack.c.bf16 %v313_v26, %v312_v25  ;;  %v331_v33 = vpack.c.bf16 %v325_v31, %v289_v22  ;;  %v337_v35 = vld [vmem:[#allocation2 + $0x42] sm:$0xff]  ;;  %v1083_v42 = vpack.c.bf16 %v312_v25, %v311_v28 }
  0x2b   : > { %v318_v30 = vpack.c.bf16 %v311_v28, %v1061_v27  ;;  %v343_v37 = vpack.c.bf16 %v337_v35, %v301_v20  ;;  %v350_v39 = vld [vmem:[#allocation2 + $0x50] sm:$0xff]  ;;  %v292_v46 = vld [vmem:[#allocation2 + $0x61] sm:$0xff] }
  0x2c   : > { %401 = vrot.lane.b32.xlu1 %v307_v23, %s965_s5  ;;  %v1081_v41 = vpack.c.bf16 %v350_v39, %v313_v26  ;;  %v362_v44 = vld [vmem:[#allocation2 + $0x51] sm:$0xff]  ;;  %v304_v51 = vld [vmem:[#allocation2 + $0x62] sm:$0xff] }
  0x2d   : > { %389 = vrot.lane.b32.xlu0 %v295_v24, %s966_s6  ;;  %v368_v45 = vpack.c.bf16 %v362_v44, %v325_v31  ;;  %v293_v47 = vld [vmem:[#allocation2 + $0x71] sm:$0xff]  ;;  %v317_v55 = vld [vmem:[#allocation2 + $0x80] sm:$0xff]  ;;  %v332_v61 = vpack.c.bf16 %v292_v46, %v362_v44 }
  0x2e   : > { %v374_v48 = vld [vmem:[#allocation2 + $0x52] sm:$0xff]  ;;  %v297_v49 = vpack.c.bf16 %v293_v47, %v292_v46  ;;  %v315_v56 = vld [vmem:[#allocation2 + $0x60] sm:$0xff]  ;;  %v358_v2 = vpack.c.bf16 %v354_v1, %v317_v55 }
  0x2f   : > { %v380_v50 = vpack.c.bf16 %v374_v48, %v337_v35  ;;  %v305_v52 = vld [vmem:[#allocation2 + $0x72] sm:$0xff]  ;;  %v320_v58 = vpack.c.bf16 %v315_v56, %v350_v39  ;;  %v329_v59 = vld [vmem:[#allocation2 + $0x81] sm:$0xff]  ;;  %v344_v0 = vpack.c.bf16 %v304_v51, %v374_v48 }
  0x30   : > { %413 = vrot.lane.b32.xlu1 %v319_v29, %s967_s9  ;;  %v309_v53 = vpack.c.bf16 %v305_v52, %v304_v51  ;;  %v316_v54 = vld [vmem:[#allocation2 + $0x70] sm:$0xff]  ;;  %v333_v60 = vpack.c.bf16 %v329_v59, %v293_v47  ;;  %v341_v62 = vld [vmem:[#allocation2 + $0x82] sm:$0xff]  ;;  %v370_v5 = vpack.c.bf16 %v366_v4, %v329_v59 }
  0x31   : > { %411 = vrot.lane.b32.xlu0 %v318_v30, %s967_s9  ;;  %v321_v57 = vpack.c.bf16 %v317_v55, %v316_v54  ;;  %v345_v63 = vpack.c.bf16 %v341_v62, %v305_v52  ;;  %v1103_v3 = vpack.c.bf16 %v316_v54, %v315_v56  ;;  %v382_v7 = vpack.c.bf16 %v378_v6, %v341_v62  ;;  %v274_v16 = vld [vmem:[#allocation2] sm:$0xff] }
  0x32   : > { %v282_v17 = vpack.c.bf16 %v1061_v27, %v274_v16 }
  0x34   : > { %425 = vrot.lane.b32.xlu1 %v331_v33, %s968_s12 }
  0x35   : > { %423 = vrot.lane.b32.xlu0 %v330_v34, %s968_s12 }
  0x38   : > { %437 = vrot.lane.b32.xlu1 %v343_v37, %s969_s16 }
  0x39   : > { %435 = vrot.lane.b32.xlu0 %v342_v38, %s969_s16 }
  0x3c   : > { %449 = vrot.lane.b32.xlu1 %v1081_v41, %s970_s18 }
  0x3d   : > { %447 = vrot.lane.b32.xlu0 %v1083_v42, %s970_s18 }
  0x40   : > { %461 = vrot.lane.b32.xlu1 %v368_v45, %s971_s19 }
  0x41   : > { %459 = vrot.lane.b32.xlu0 %v295_v24, %s971_s19 }
  0x44   : > { %391 = vrot.lane.b32.xlu1 %v368_v45, %s966_s6 }
  0x45   : > { %471 = vrot.lane.b32.xlu0 %v307_v23, %s972_s20 }
  0x48   : > { %393 = vrot.lane.b32.xlu1 %v297_v49, %s966_s6 }
  0x49   : > { %473 = vrot.lane.b32.xlu0 %v380_v50, %s972_s20 }
  0x4c   : > { %405 = vrot.lane.b32.xlu1 %v309_v53, %s965_s5 }
  0x4d   : > { %403 = vrot.lane.b32.xlu0 %v380_v50, %s965_s5 }
  0x50   : > { %417 = vrot.lane.b32.xlu1 %v321_v57, %s967_s9 }
  0x51   : > { %415 = vrot.lane.b32.xlu0 %v320_v58, %s967_s9 }
  0x54   : > { %429 = vrot.lane.b32.xlu1 %v333_v60, %s968_s12 }
  0x55   : > { %427 = vrot.lane.b32.xlu0 %v332_v61, %s968_s12 }
  0x58   : > { %441 = vrot.lane.b32.xlu1 %v345_v63, %s969_s16 }
  0x59   : > { %439 = vrot.lane.b32.xlu0 %v344_v0, %s969_s16 }
  0x5c   : > { %453 = vrot.lane.b32.xlu1 %v358_v2, %s970_s18 }
  0x5d   : > { %451 = vrot.lane.b32.xlu0 %v1103_v3, %s970_s18 }
  0x60   : > { %465 = vrot.lane.b32.xlu1 %v370_v5, %s971_s19 }
  0x61   : > { %463 = vrot.lane.b32.xlu0 %v297_v49, %s971_s19 }
  0x64   : > { %477 = vrot.lane.b32.xlu1 %v382_v7, %s972_s20 }
  0x65   : > { %475 = vrot.lane.b32.xlu0 %v309_v53, %s972_s20 }
  0x9a   : > { %v400_v8 = vpop.permute.xlu1 %399 }
  0x9b   : > { %v388_v9 = vpop.permute.xlu0 %387 }
  0x9c   : > { %v481_v20 = vsel %vm265_vm3, %v282_v17, %v388_v9 }
  0x9d   : > { %v493_v23 = vsel %vm491_vm5, %v481_v20, %v400_v8 }
  0x9e   : > { %v402_v10 = vpop.permute.xlu1 %401 }
  0x9f   : > { %v390_v11 = vpop.permute.xlu0 %389 }
  0xa0   : > { %v484_v24 = vsel %vm265_vm3, %v1083_v42, %v390_v11 }
  0xa1   : > { %v495_v30 = vsel %vm491_vm5, %v484_v24, %v402_v10 }
  0xa2   : > { %v414_v12 = vpop.permute.xlu1 %413 }
  0xa3   : > { %v412_v13 = vpop.permute.xlu0 %411  ;;  %v504_v32 = vsel %vm500_vm6, %v495_v30, %v414_v12 }
  0xa4   : > { %v502_v25 = vsel %vm500_vm6, %v493_v23, %v412_v13 }
  0xa6   : > { %v426_v14 = vpop.permute.xlu1 %425 }
  0xa7   : > { %v424_v15 = vpop.permute.xlu0 %423  ;;  %v513_v36 = vsel %vm509_vm7, %v504_v32, %v426_v14 }
  0xa8   : > { %v511_v28 = vsel %vm509_vm7, %v502_v25, %v424_v15 }
  0xaa   : > { %v438_v18 = vpop.permute.xlu1 %437 }
  0xab   : > { %v436_v19 = vpop.permute.xlu0 %435  ;;  %v522_v38 = vsel %vm518_vm8, %v513_v36, %v438_v18 }
  0xac   : > { %v520_v29 = vsel %vm518_vm8, %v511_v28, %v436_v19 }
  0xae   : > { %v450_v21 = vpop.permute.xlu1 %449 }
  0xaf   : > { %v448_v22 = vpop.permute.xlu0 %447  ;;  %v531_v39 = vsel %vm527_vm9, %v522_v38, %v450_v21 }
  0xb0   : > { %v529_v31 = vsel %vm527_vm9, %v520_v29, %v448_v22 }
  0xb2   : > { %v462_v26 = vpop.permute.xlu1 %461 }
  0xb3   : > { %v460_v27 = vpop.permute.xlu0 %459  ;;  %v540_v40 = vsel %vm536_vm10, %v531_v39, %v462_v26 }
  0xb4   : > { %v538_v33 = vsel %vm536_vm10, %v529_v31, %v460_v27 }
  0xb6   : > { %v392_v34 = vpop.permute.xlu1 %391 }
  0xb7   : > { %v472_v35 = vpop.permute.xlu0 %471  ;;  %v487_v55 = vsel %vm265_vm3, %v1081_v41, %v392_v34 }
  0xb8   : > { %v547_v37 = vsel %vm545_vm11, %v538_v33, %v472_v35 }
  0xb9   : > { %920 = vmatprep.mubr.msk.bf16.mxu0 %vm574_vm12, %v547_v37 }
  0xba   : > { %v394_v42 = vpop.permute.xlu1 %393 }
  0xbb   : > { %v474_v43 = vpop.permute.xlu0 %473  ;;  %v490_v56 = vsel %vm265_vm3, %v1103_v3, %v394_v42 }
  0xbc   : > { %v549_v44 = vsel %vm545_vm11, %v540_v40, %v474_v43 }
  0xbd   : > { %921 = vmatmul.mubr.msk.bf16.vlgmr.msra.gmra.mrb[0].mxu0 %vm574_vm12, %v549_v44 }
  0xbe   : > { %v406_v45 = vpop.permute.xlu1 %405 }
  0xbf   : > { %v404_v46 = vpop.permute.xlu0 %403  ;;  %v499_v57 = vsel %vm491_vm5, %v490_v56, %v406_v45 }
  0xc0   : > { %v497_v58 = vsel %vm491_vm5, %v487_v55, %v404_v46 }
  0xc2   : > { %v418_v47 = vpop.permute.xlu1 %417 }
  0xc3   : > { %v416_v48 = vpop.permute.xlu0 %415  ;;  %v508_v59 = vsel %vm500_vm6, %v499_v57, %v418_v47 }
  0xc4   : > { %v506_v60 = vsel %vm500_vm6, %v497_v58, %v416_v48 }
  0xc6   : > { %v430_v49 = vpop.permute.xlu1 %429 }
  0xc7   : > { %v428_v50 = vpop.permute.xlu0 %427  ;;  %v517_v63 = vsel %vm509_vm7, %v508_v59, %v430_v49 }
  0xc8   : > { %v515_v0 = vsel %vm509_vm7, %v506_v60, %v428_v50 }
  0xca   : > { %v442_v51 = vpop.permute.xlu1 %441 }
  0xcb   : > { %v440_v52 = vpop.permute.xlu0 %439  ;;  %v526_v1 = vsel %vm518_vm8, %v517_v63, %v442_v51 }
  0xcc   : > { %v524_v41 = vsel %vm518_vm8, %v515_v0, %v440_v52 }
  0xce   : > { %v454_v53 = vpop.permute.xlu1 %453 }
  0xcf   : > { %v452_v54 = vpop.permute.xlu0 %451  ;;  %v535_v2 = vsel %vm527_vm9, %v526_v1, %v454_v53 }
  0xd0   : > { %v533_v3 = vsel %vm527_vm9, %v524_v41, %v452_v54 }
  0xd2   : > { %v466_v61 = vpop.permute.xlu1 %465 }
  0xd3   : > { %v464_v62 = vpop.permute.xlu0 %463  ;;  %v544_v4 = vsel %vm536_vm10, %v535_v2, %v466_v61 }
  0xd4   : > { %v542_v5 = vsel %vm536_vm10, %v533_v3, %v464_v62 }
  0xd6   : > { %v478_v6 = vpop.permute.xlu1 %477 }
  0xd7   : > { %v476_v7 = vpop.permute.xlu0 %475  ;;  %v553_v8 = vsel %vm545_vm11, %v544_v4, %v478_v6 }
  0xd8   : > { %v551_v9 = vsel %vm545_vm11, %v542_v5, %v476_v7 }
  0xd9   : > { %924 = vmatprep.mubr.msk.bf16.mxu1 %vm574_vm12, %v551_v9 }
  0xda   : > { %925 = vmatmul.mubr.msk.bf16.vlgmr.msra.gmra.mrb[0].mxu1 %vm574_vm12, %v553_v8 }
 0x190   : > { %v922_v10 = vpop.f32.mrb[0].mxu0 }
 0x191   : > { %v882_v11 = vpack.c.bf16 %v922_v10, %v922_v10  ;;  %v621_v12 = vpop.f32.mrb[1].mxu0  ;;  %v718_v16 = vmul.f32 %v922_v10, %v922_v10  ;;  %v696_v24 = vsel %vm491_vm5, %v922_v10, 0.0 }
 0x192   : > { %v880_v13 = vpack.c.bf16 %v621_v12, %v621_v12  ;;  %v716_v14 = vmul.f32 %v621_v12, %v621_v12  ;;  %v923_v15 = vpop.f32.mrb[2].mxu0  ;;  %v693_v19 = vsel %vm491_vm5, %v621_v12, 0.0 }
 0x193   : > { %687 = vst.msk [vmem:[%s1021_s27 + $0x8] sm:$0xf] %vm684_vm13, %v882_v11  ;;  %v883_v17 = vpack.c.bf16 %v923_v15, %v923_v15  ;;  %v624_v18 = vpop.f32.mrb[3].mxu0  ;;  %v719_v26 = vmul.f32 %v923_v15, %v923_v15  ;;  %v727_v30 = vsel %vm491_vm5, %v718_v16, 0.0  ;;  %v698_v31 = vsel %vm491_vm5, %v923_v15, 0.0 }
 0x194   : > { %685 = vst.msk [vmem:[%s1021_s27] sm:$0xf] %vm684_vm13, %v880_v13  ;;  %v881_v20 = vpack.c.bf16 %v624_v18, %v624_v18  ;;  %v694_v21 = vsel %vm491_vm5, %v624_v18, 0.0  ;;  %v717_v22 = vmul.f32 %v624_v18, %v624_v18  ;;  %v724_v25 = vsel %vm491_vm5, %v716_v14, 0.0 }
 0x195   : > { %688 = vst.msk [vmem:[%s1021_s27 + $0xc] sm:$0xf] %vm684_vm13, %v883_v17  ;;  %v695_v23 = vadd.f32 %v694_v21, %v693_v19  ;;  %v729_v34 = vsel %vm491_vm5, %v719_v26, 0.0 }
 0x196   : > { %686 = vst.msk [vmem:[%s1021_s27 + $0x4] sm:$0xf] %vm684_vm13, %v881_v20  ;;  %v725_v27 = vsel %vm491_vm5, %v717_v22, 0.0 }
 0x197   : > { %v697_v28 = vadd.f32 %v696_v24, %v695_v23  ;;  %v726_v29 = vadd.f32 %v725_v27, %v724_v25 }
 0x199   : > { %v728_v32 = vadd.f32 %v727_v30, %v726_v29  ;;  %v699_v33 = vadd.f32 %v698_v31, %v697_v28 }
 0x19b   : > { %v730_v35 = vadd.f32 %v729_v34, %v728_v32 }
 0x1ad   : > { %v926_v36 = vpop.f32.mrb[0].mxu1 }
 0x1ae   : > { %v886_v37 = vpack.c.bf16 %v926_v36, %v926_v36  ;;  %v637_v38 = vpop.f32.mrb[1].mxu1  ;;  %v722_v50 = vmul.f32 %v926_v36, %v926_v36  ;;  %v704_v54 = vsel %vm491_vm5, %v926_v36, 0.0 }
 0x1af   : > { %v884_v39 = vpack.c.bf16 %v637_v38, %v637_v38  ;;  %v700_v40 = vsel %vm491_vm5, %v637_v38, 0.0  ;;  %v720_v42 = vmul.f32 %v637_v38, %v637_v38  ;;  %v927_v43 = vpop.f32.mrb[2].mxu1 }
 0x1b0   : > { %691 = vst.msk [vmem:[%s1021_s27 + $0x18] sm:$0xf] %vm684_vm13, %v886_v37  ;;  %v701_v44 = vadd.f32 %v700_v40, %v699_v33  ;;  %v887_v45 = vpack.c.bf16 %v927_v43, %v927_v43  ;;  %v640_v46 = vpop.f32.mrb[3].mxu1  ;;  %v723_v55 = vmul.f32 %v927_v43, %v927_v43  ;;  %v706_v58 = vsel %vm491_vm5, %v927_v43, 0.0 }
 0x1b1   : > { %689 = vst.msk [vmem:[%s1021_s27 + $0x10] sm:$0xf] %vm684_vm13, %v884_v39  ;;  %v731_v47 = vsel %vm491_vm5, %v720_v42, 0.0  ;;  %v885_v48 = vpack.c.bf16 %v640_v46, %v640_v46  ;;  %v702_v49 = vsel %vm491_vm5, %v640_v46, 0.0  ;;  %v721_v53 = vmul.f32 %v640_v46, %v640_v46 }
 0x1b2   : > { %v732_v51 = vadd.f32 %v731_v47, %v730_v35  ;;  %692 = vst.msk [vmem:[%s1021_s27 + $0x1c] sm:$0xf] %vm684_vm13, %v887_v45  ;;  %v703_v52 = vadd.f32 %v702_v49, %v701_v44  ;;  %v735_v60 = vsel %vm491_vm5, %v722_v50, 0.0  ;;  %v737_v63 = vsel %vm491_vm5, %v723_v55, 0.0 }
 0x1b3   : > { %690 = vst.msk [vmem:[%s1021_s27 + $0x14] sm:$0xf] %vm684_vm13, %v885_v48  ;;  %v733_v57 = vsel %vm491_vm5, %v721_v53, 0.0 }
 0x1b4   : > { %v705_v56 = vadd.f32 %v704_v54, %v703_v52  ;;  %v734_v59 = vadd.f32 %v733_v57, %v732_v51 }
 0x1b6   : > { %v707_v61 = vadd.f32 %v706_v58, %v705_v56  ;;  %v736_v62 = vadd.f32 %v735_v60, %v734_v59 }
 0x1b8   : > { %v708_v0 = vrot.slane %v707_v61, 4  ;;  %v738_v1 = vadd.f32 %v737_v63, %v736_v62 }
 0x1ba   : > { %v709_v41 = vadd.f32 %v708_v0, %v707_v61  ;;  %v739_v2 = vrot.slane %v738_v1, 4 }
 0x1bc   : > { %v710_v3 = vrot.slane %v709_v41, 2  ;;  %v740_v4 = vadd.f32 %v739_v2, %v738_v1 }
 0x1be   : > { %v711_v5 = vadd.f32 %v710_v3, %v709_v41  ;;  %v741_v6 = vrot.slane %v740_v4, 2 }
 0x1c0   : > { %v712_v7 = vrot.slane %v711_v5, 1  ;;  %v742_v8 = vadd.f32 %v741_v6, %v740_v4 }
 0x1c2   : > { %v713_v9 = vadd.f32 %v712_v7, %v711_v5  ;;  %v743_v10 = vrot.slane %v742_v8, 1 }
 0x1c4   : > { %715 = vst.msk [vmem:[%s211_s21] sm:$0x1] %vm714_vm14, %v713_v9  ;;  %v744_v11 = vadd.f32 %v743_v10, %v742_v8 }
 0x1c6   : > { %745 = vst.msk [vmem:[%s214_s30] sm:$0x1] %vm714_vm14, %v744_v11 }
 0x1c7 PF: > { %s15_s15 = sadd.s32 1, %s962_s15  }
 0x1c8   : > { %p12_p5 = scmp.ge.s32.totalorder %s15_s15, 4  }
 0x1ca   :  { %14 = sbr.rel (!%p12_p5) target bundleno = 1 (0x1), region = 89 }

// kernel: down_forward.4
= control target key start
LH: loop header
LB: loop body
LE: loop exit
PB: predicated region body
PF: predicated region fallthrough
CT: control target
= control target key end

     0   :  { %s1132_s21 = smov 0   ;;  %s1347_s0 = inlined_call_operand.vmem [shape: bf16[2,8,8,8], index: 0, kind: input, shape index: {}]   ;;  %s1348_s1 = inlined_call_operand.vmem [shape: f32[1,8], index: 1, kind: input, shape index: {}]   ;;  %s1349_s2 = inlined_call_operand.vmem [shape: f32[1,8], index: 2, kind: input, shape index: {}]   ;;  %s1350_s3 = inlined_call_operand.vmem [shape: bf16[72,8], index: 3, kind: input, shape index: {}]   ;;  %s1351_s4 = inlined_call_operand.vmem [shape: bf16[2,64,8], index: 4, kind: output, shape index: {0}]   ;;  %s1352_s5 = inlined_call_operand.vmem [shape: f32[2,1,8], index: 5, kind: output, shape index: {1}]   ;;  %s1353_s6 = inlined_call_operand.vmem [shape: f32[2,1,8], index: 6, kind: output, shape index: {2}]  }
   0x1 LB: > { %s959_s22 = sadd.s32 4294967295, %s1086_s21   ;;  %p963_p0 = scmp.ge.s32.totalorder %s1086_s21, 1  ;;  %s1086_s21 = sphi %s1132_s21, %s17_s21  }
   0x2   : > { %p217_p1 = scmp.lt.s32.totalorder %s1086_s21, 3 }
   0x4   : > { %p218_p2 = pnand %p963_p0, %p217_p1 }
   0x5   : > { %p253_p3 = scmp.lt.s32.totalorder (!%p218_p2), %s959_s22, 1  ;;  %p968_p4 = scmp.ne.s32.totalorder (!%p218_p2), %s959_s22, 0 }
   0x6   : > { %221 = sbr.rel (%p218_p2) target bundleno = 461 (0x1cd), region = 36 }
   0xd   : > { %s1140_s23 = scalar_select %p253_p3, %s959_s22, 1 }
   0xe   : > { %273 = sbr.rel (%p968_p4) target bundleno = 27 (0x1b), region = 40  ;;  %vm274_vm0 = vcmask (!%p968_p4), 64512   ;;  %vm276_vm1 = vcmask (!%p968_p4), 58368   ;;  %vm281_vm2 = vcmask (!%p968_p4), 57344   ;;  %v1088_v0 = vmov (!%p968_p4), 0.0  }
   0xf   : > { %s990_s24 = sshll.u32 %s1140_s23, 5  ;;  %s265_s27 = scalar_lea.vmem %s1352_s5, %s1140_s23  ;;  %275 = vst.msk [vmem:[#allocation2] sm:$0xff] (!%p968_p4), %vm274_vm0, %v1088_v0  ;;  %279 = vst.msk [vmem:[#allocation2 + $0x90] sm:$0xff] (!%p968_p4), %vm274_vm0, %v1088_v0 }
  0x10   : > { %s1150_s30 = scalar_lea.vmem %s1347_s0, %s990_s24  ;;  %s1155_s9 = scalar_lea.vmem %s1351_s4, %s990_s24  ;;  %277 = vst.msk [vmem:[#allocation2 + $0x8] sm:$0x3] (!%p968_p4), %vm276_vm1, %v1088_v0  ;;  %280 = vst.msk [vmem:[#allocation2 + $0x98] sm:$0x3] (!%p968_p4), %vm276_vm1, %v1088_v0 }
  0x11   : > { %s268_s12 = scalar_lea.vmem %s1353_s6, %s1140_s23  ;;  %283 = vst.msk [vmem:[#allocation2 + $0x10] sm:$0x1] (!%p968_p4), %vm281_vm2, %v1088_v0  ;;  %284 = vst.msk [vmem:[#allocation2 + $0x20] sm:$0x1] (!%p968_p4), %vm281_vm2, %v1088_v0 }
  0x12   : > { %285 = vst.msk [vmem:[#allocation2 + $0x30] sm:$0x1] (!%p968_p4), %vm281_vm2, %v1088_v0  ;;  %286 = vst.msk [vmem:[#allocation2 + $0x40] sm:$0x1] (!%p968_p4), %vm281_vm2, %v1088_v0 }
  0x13   : > { %287 = vst.msk [vmem:[#allocation2 + $0x50] sm:$0x1] (!%p968_p4), %vm281_vm2, %v1088_v0  ;;  %288 = vst.msk [vmem:[#allocation2 + $0x60] sm:$0x1] (!%p968_p4), %vm281_vm2, %v1088_v0 }
  0x14   : > { %289 = vst.msk [vmem:[#allocation2 + $0x70] sm:$0x1] (!%p968_p4), %vm281_vm2, %v1088_v0  ;;  %290 = vst.msk [vmem:[#allocation2 + $0x80] sm:$0x1] (!%p968_p4), %vm281_vm2, %v1088_v0 }
  0x15   : > { %293 = vst.msk [vmem:[#allocation2 + $0x19] sm:$0x1] %vm281_vm2, %v1088_v0  ;;  %294 = vst.msk [vmem:[#allocation2 + $0x29] sm:$0x1] %vm281_vm2, %v1088_v0 }
  0x16   : > { %295 = vst.msk [vmem:[#allocation2 + $0x39] sm:$0x1] %vm281_vm2, %v1088_v0  ;;  %296 = vst.msk [vmem:[#allocation2 + $0x49] sm:$0x1] %vm281_vm2, %v1088_v0 }
  0x17   : > { %297 = vst.msk [vmem:[#allocation2 + $0x59] sm:$0x1] %vm281_vm2, %v1088_v0  ;;  %298 = vst.msk [vmem:[#allocation2 + $0x69] sm:$0x1] %vm281_vm2, %v1088_v0 }
  0x18   : > { %299 = vst.msk [vmem:[#allocation2 + $0x79] sm:$0x1] %vm281_vm2, %v1088_v0  ;;  %300 = vst.msk [vmem:[#allocation2 + $0x89] sm:$0x1] %vm281_vm2, %v1088_v0 }
  0x19   : > { %282 = vst.msk [vmem:[#allocation2] sm:$0x1] %vm281_vm2, %v1088_v0  ;;  %291 = vst.msk [vmem:[#allocation2 + $0x90] sm:$0x1] %vm281_vm2, %v1088_v0 }
  0x1a   : > { %292 = vst.msk [vmem:[#allocation2 + $0x9] sm:$0x1] %vm281_vm2, %v1088_v0  ;;  %301 = vst.msk [vmem:[#allocation2 + $0x99] sm:$0x1] %vm281_vm2, %v1088_v0 }
  0x1b PF: > { %v1001_v1 = vld [vmem:[%s1150_s30] sm:$0xff]   ;;  %v1016_v5 = vld [vmem:[%s1150_s30 + $0x8] sm:$0xff]   ;;  %vm357_vm3 = vcmask 64512   ;;  %v1017_v9 = vld [vmem:[%s1150_s30 + $0x10] sm:$0xff]   ;;  %s1089_s17 = smov 16   ;;  %s1090_s18 = smov 8  }
  0x1c   : > { %v969_v2 = vld [vmem:[%s1348_s1] ss:$0 sm:$0xff]  ;;  %v1002_v3 = vunpack.c.l.bf16 %v1001_v1  ;;  %v1003_v4 = vunpack.c.h.bf16 %v1001_v1  ;;  %v1006_v7 = vunpack.c.l.bf16 %v1016_v5  ;;  %v1007_v8 = vunpack.c.h.bf16 %v1016_v5  ;;  %v1018_v10 = vld [vmem:[%s1150_s30 + $0x18] sm:$0xff]   ;;  %v1076_v59 = vld [vmem:[%s1350_s3 + $0x8] sm:$0xff]   ;;  %s1091_s25 = smov 24   ;;  %s1092_s29 = smov 32  }
  0x1d   : > { %v970_v6 = vld [vmem:[%s1349_s2] ss:$0 sm:$0xff]  ;;  %v1010_v13 = vunpack.c.l.bf16 %v1017_v9  ;;  %v1011_v14 = vunpack.c.h.bf16 %v1017_v9  ;;  %v1014_v17 = vunpack.c.l.bf16 %v1018_v10  ;;  %v1015_v18 = vunpack.c.h.bf16 %v1018_v10  ;;  %v378_v40 = vld [vmem:[#allocation2 + $0x1] sm:$0xff]  ;;  %v1077_v63 = vld [vmem:[%s1350_s3 + $0x10] sm:$0xff]   ;;  %s1093_s8 = smov 40   ;;  %s1094_s13 = smov 48  }
  0x1e   : > { %v325_v11 = vmul.f32 %v1002_v3, %v969_v2  ;;  %v326_v12 = vmul.f32 %v1003_v4, %v969_v2  ;;  %v327_v15 = vmul.f32 %v1006_v7, %v969_v2  ;;  %v328_v16 = vmul.f32 %v1007_v8, %v969_v2  ;;  %v1075_v58 = vld [vmem:[%s1350_s3] sm:$0xff]   ;;  %v1078_v3 = vld [vmem:[%s1350_s3 + $0x18] sm:$0xff]   ;;  %s1095_s14 = smov 56   ;;  %s1096_s15 = smov 64  }
  0x1f   : > { %v329_v21 = vmul.f32 %v1010_v13, %v969_v2  ;;  %v330_v22 = vmul.f32 %v1011_v14, %v969_v2  ;;  %v331_v25 = vmul.f32 %v1014_v17, %v969_v2  ;;  %v332_v26 = vmul.f32 %v1015_v18, %v969_v2  ;;  %1028 = vmatprep.subr.bf16.mxu0 %v1075_v58  ;;  %v1079_v7 = vld [vmem:[%s1350_s3 + $0x20] ss:$0 sps:$4 sm:$0xff]  }
  0x20   : > { %v340_v19 = vadd.f32 %v970_v6, %v325_v11  ;;  %v341_v20 = vadd.f32 %v970_v6, %v326_v12  ;;  %v342_v23 = vadd.f32 %v970_v6, %v327_v15  ;;  %v343_v24 = vadd.f32 %v970_v6, %v328_v16  ;;  %1046 = vmatprep.subr.bf16.mxu1 %v1075_v58 }
  0x21   : > { %v344_v29 = vadd.f32 %v970_v6, %v329_v21  ;;  %v345_v30 = vadd.f32 %v970_v6, %v330_v22  ;;  %v346_v33 = vadd.f32 %v970_v6, %v331_v25  ;;  %v347_v34 = vadd.f32 %v970_v6, %v332_v26  ;;  %v390_v39 = vld [vmem:[#allocation2 + $0x2] sm:$0xff]  ;;  %1029 = vmatpush3.bf16.msra.mxu0 %v1075_v58 }
  0x22   : > { %v348_v27 = vmax.f32 %v340_v19, 0.0  ;;  %v349_v28 = vmax.f32 %v341_v20, 0.0  ;;  %v350_v31 = vmax.f32 %v342_v23, 0.0  ;;  %v351_v32 = vmax.f32 %v343_v24, 0.0  ;;  %1051 = vmatpush3.bf16.msra.mxu1 %v1075_v58  ;;  %1030 = vmatprep.subr.bf16.mxu0 %v1076_v59 }
  0x23   : > { %v352_v35 = vmax.f32 %v344_v29, 0.0  ;;  %v353_v36 = vmax.f32 %v345_v30, 0.0  ;;  %v354_v37 = vmax.f32 %v346_v33, 0.0  ;;  %v355_v38 = vmax.f32 %v347_v34, 0.0  ;;  %1047 = vmatprep.subr.bf16.mxu1 %v1076_v59  ;;  %v446_v29 = vld [vmem:[#allocation2 + $0x90] sm:$0xff] }
  0x24   : > { %358 = vst.msk [vmem:[#allocation2 + $0x11] sm:$0xff] %vm357_vm3, %v348_v27  ;;  %359 = vst.msk [vmem:[#allocation2 + $0x21] sm:$0xff] %vm357_vm3, %v349_v28  ;;  %vm691_vm4 = vcmask 1043456   ;;  %v470_v34 = vld [vmem:[#allocation2 + $0x92] sm:$0xff]  ;;  %vm583_vm5 = vcmask 130048   ;;  %vm592_vm6 = vcmask 195584  }
  0x25   : > { %360 = vst.msk [vmem:[#allocation2 + $0x31] sm:$0xff] %vm357_vm3, %v350_v31  ;;  %361 = vst.msk [vmem:[#allocation2 + $0x41] sm:$0xff] %vm357_vm3, %v351_v32  ;;  %1031 = vmatpush3.bf16.msra.mxu0 %v1076_v59  ;;  %v693_v9 = vsel %vm691_vm4, %v1079_v7, 0  ;;  %v458_v32 = vld [vmem:[#allocation2 + $0x91] sm:$0xff]  ;;  %vm601_vm7 = vcmask 261120   ;;  %vm610_vm8 = vcmask 326656  }
  0x26   : > { %362 = vst.msk [vmem:[#allocation2 + $0x51] sm:$0xff] %vm357_vm3, %v352_v35  ;;  %363 = vst.msk [vmem:[#allocation2 + $0x61] sm:$0xff] %vm357_vm3, %v353_v36  ;;  %1052 = vmatpush3.bf16.msra.mxu1 %v1076_v59  ;;  %1032 = vmatprep.subr.bf16.mxu0 %v1077_v63  ;;  %vm619_vm9 = vcmask 392192   ;;  %vm628_vm10 = vcmask 457728   ;;  %vm637_vm11 = vcmask 523264   ;;  %vm682_vm12 = vcmask 588800  }
  0x27   : > { %364 = vst.msk [vmem:[#allocation2 + $0x71] sm:$0xff] %vm357_vm3, %v354_v37  ;;  %365 = vst.msk [vmem:[#allocation2 + $0x81] sm:$0xff] %vm357_vm3, %v355_v38  ;;  %1048 = vmatprep.subr.bf16.mxu1 %v1077_v63  ;;  %vm792_vm13 = vcmask 60416   ;;  %vm822_vm14 = vcmask 57344  }
  0x29   : > { %1033 = vmatpush3.bf16.msra.mxu0 %v1077_v63 }
  0x2a   : > { %1053 = vmatpush3.bf16.msra.mxu1 %v1077_v63  ;;  %1034 = vmatprep.subr.bf16.mxu0 %v1078_v3 }
  0x2b   : > { %v391_v41 = vld [vmem:[#allocation2 + $0x12] sm:$0xff]  ;;  %v392_v43 = vld [vmem:[#allocation2 + $0x22] sm:$0xff]  ;;  %1049 = vmatprep.subr.bf16.mxu1 %v1078_v3 }
  0x2c   : > { %v379_v42 = vld [vmem:[#allocation2 + $0x11] sm:$0xff]  ;;  %v398_v44 = vpack.c.bf16 %v391_v41, %v390_v39  ;;  %v380_v47 = vld [vmem:[#allocation2 + $0x21] sm:$0xff]  ;;  %v434_v1 = vpack.c.bf16 %v392_v43, %v391_v41 }
  0x2d   : > { %v386_v45 = vpack.c.bf16 %v379_v42, %v378_v40  ;;  %v393_v46 = vld [vmem:[#allocation2 + $0x32] sm:$0xff]  ;;  %v405_v52 = vld [vmem:[#allocation2 + $0x40] sm:$0xff]  ;;  %v422_v61 = vpack.c.bf16 %v380_v47, %v379_v42  ;;  %1035 = vmatpush3.bf16.msra.mxu0 %v1078_v3 }
  0x2e   : > { %v381_v48 = vld [vmem:[#allocation2 + $0x31] sm:$0xff]  ;;  %491 = vrot.lane.b32.xlu1 %v398_v44, %s1089_s17  ;;  %v1201_v49 = vpack.c.bf16 %v393_v46, %v392_v43  ;;  %v403_v54 = vld [vmem:[#allocation2 + $0x20] sm:$0xff]  ;;  %1054 = vmatpush3.bf16.msra.mxu1 %v1078_v3 }
  0x2f   : > { %479 = vrot.lane.b32.xlu0 %v386_v45, %s1090_s18  ;;  %v387_v50 = vpack.c.bf16 %v381_v48, %v380_v47  ;;  %v404_v51 = vld [vmem:[#allocation2 + $0x30] sm:$0xff]  ;;  %v417_v57 = vld [vmem:[#allocation2 + $0x41] sm:$0xff]  ;;  %1056 = vmatprep.subr.msk.bf16.mxu0 %vm691_vm4, %v1079_v7 }
  0x30   : > { %v1203_v53 = vld [vmem:[#allocation2 + $0x10] sm:$0xff]  ;;  %v411_v55 = vpack.c.bf16 %v405_v52, %v404_v51  ;;  %v423_v60 = vpack.c.bf16 %v417_v57, %v381_v48  ;;  %v429_v62 = vld [vmem:[#allocation2 + $0x42] sm:$0xff]  ;;  %v1229_v5 = vpack.c.bf16 %v404_v51, %v403_v54  ;;  %1057 = vmatprep.subr.msk.bf16.mxu1 %vm691_vm4, %v1079_v7 }
  0x31   : > { %v410_v56 = vpack.c.bf16 %v403_v54, %v1203_v53  ;;  %v435_v0 = vpack.c.bf16 %v429_v62, %v393_v46  ;;  %v442_v2 = vld [vmem:[#allocation2 + $0x50] sm:$0xff]  ;;  %v384_v10 = vld [vmem:[#allocation2 + $0x61] sm:$0xff]  ;;  %1037 = vmatpush3.bf16.msra.mxu0 %v693_v9 }
  0x32   : > { %493 = vrot.lane.b32.xlu1 %v1201_v49, %s1089_s17  ;;  %v1227_v4 = vpack.c.bf16 %v442_v2, %v405_v52  ;;  %v454_v6 = vld [vmem:[#allocation2 + $0x51] sm:$0xff]  ;;  %1055 = vmatpush3.bf16.msra.mxu1 %v693_v9  ;;  %v396_v15 = vld [vmem:[#allocation2 + $0x62] sm:$0xff] }
  0x33   : > { %481 = vrot.lane.b32.xlu0 %v387_v50, %s1090_s18  ;;  %v460_v8 = vpack.c.bf16 %v454_v6, %v417_v57  ;;  %v385_v11 = vld [vmem:[#allocation2 + $0x71] sm:$0xff]  ;;  %v409_v19 = vld [vmem:[#allocation2 + $0x80] sm:$0xff]  ;;  %v424_v25 = vpack.c.bf16 %v384_v10, %v454_v6 }
  0x34   : > { %v466_v12 = vld [vmem:[#allocation2 + $0x52] sm:$0xff]  ;;  %v389_v13 = vpack.c.bf16 %v385_v11, %v384_v10  ;;  %v407_v20 = vld [vmem:[#allocation2 + $0x60] sm:$0xff]  ;;  %v450_v30 = vpack.c.bf16 %v446_v29, %v409_v19 }
  0x35   : > { %v472_v14 = vpack.c.bf16 %v466_v12, %v429_v62  ;;  %v397_v16 = vld [vmem:[#allocation2 + $0x72] sm:$0xff]  ;;  %v412_v22 = vpack.c.bf16 %v407_v20, %v442_v2  ;;  %v421_v23 = vld [vmem:[#allocation2 + $0x81] sm:$0xff]  ;;  %v436_v28 = vpack.c.bf16 %v396_v15, %v466_v12 }
  0x36   : > { %505 = vrot.lane.b32.xlu1 %v411_v55, %s1091_s25  ;;  %v401_v17 = vpack.c.bf16 %v397_v16, %v396_v15  ;;  %v408_v18 = vld [vmem:[#allocation2 + $0x70] sm:$0xff]  ;;  %v425_v24 = vpack.c.bf16 %v421_v23, %v385_v11  ;;  %v433_v26 = vld [vmem:[#allocation2 + $0x82] sm:$0xff]  ;;  %v462_v33 = vpack.c.bf16 %v458_v32, %v421_v23 }
  0x37   : > { %503 = vrot.lane.b32.xlu0 %v410_v56, %s1091_s25  ;;  %v413_v21 = vpack.c.bf16 %v409_v19, %v408_v18  ;;  %v437_v27 = vpack.c.bf16 %v433_v26, %v397_v16  ;;  %v1253_v31 = vpack.c.bf16 %v408_v18, %v407_v20  ;;  %v474_v35 = vpack.c.bf16 %v470_v34, %v433_v26  ;;  %v366_v44 = vld [vmem:[#allocation2] sm:$0xff] }
  0x38   : > { %v374_v45 = vpack.c.bf16 %v1203_v53, %v366_v44 }
  0x3a   : > { %517 = vrot.lane.b32.xlu1 %v423_v60, %s1092_s29 }
  0x3b   : > { %515 = vrot.lane.b32.xlu0 %v422_v61, %s1092_s29 }
  0x3e   : > { %529 = vrot.lane.b32.xlu1 %v435_v0, %s1093_s8 }
  0x3f   : > { %527 = vrot.lane.b32.xlu0 %v434_v1, %s1093_s8 }
  0x42   : > { %541 = vrot.lane.b32.xlu1 %v1227_v4, %s1094_s13 }
  0x43   : > { %539 = vrot.lane.b32.xlu0 %v1229_v5, %s1094_s13 }
  0x46   : > { %553 = vrot.lane.b32.xlu1 %v460_v8, %s1095_s14 }
  0x47   : > { %551 = vrot.lane.b32.xlu0 %v387_v50, %s1095_s14 }
  0x4a   : > { %483 = vrot.lane.b32.xlu1 %v460_v8, %s1090_s18 }
  0x4b   : > { %563 = vrot.lane.b32.xlu0 %v1201_v49, %s1096_s15 }
  0x4e   : > { %485 = vrot.lane.b32.xlu1 %v389_v13, %s1090_s18 }
  0x4f   : > { %565 = vrot.lane.b32.xlu0 %v472_v14, %s1096_s15 }
  0x52   : > { %497 = vrot.lane.b32.xlu1 %v401_v17, %s1089_s17 }
  0x53   : > { %495 = vrot.lane.b32.xlu0 %v472_v14, %s1089_s17 }
  0x56   : > { %509 = vrot.lane.b32.xlu1 %v413_v21, %s1091_s25 }
  0x57   : > { %507 = vrot.lane.b32.xlu0 %v412_v22, %s1091_s25 }
  0x5a   : > { %521 = vrot.lane.b32.xlu1 %v425_v24, %s1092_s29 }
  0x5b   : > { %519 = vrot.lane.b32.xlu0 %v424_v25, %s1092_s29 }
  0x5e   : > { %533 = vrot.lane.b32.xlu1 %v437_v27, %s1093_s8 }
  0x5f   : > { %531 = vrot.lane.b32.xlu0 %v436_v28, %s1093_s8 }
  0x62   : > { %545 = vrot.lane.b32.xlu1 %v450_v30, %s1094_s13 }
  0x63   : > { %543 = vrot.lane.b32.xlu0 %v1253_v31, %s1094_s13 }
  0x66   : > { %557 = vrot.lane.b32.xlu1 %v462_v33, %s1095_s14 }
  0x67   : > { %555 = vrot.lane.b32.xlu0 %v389_v13, %s1095_s14 }
  0x6a   : > { %569 = vrot.lane.b32.xlu1 %v474_v35, %s1096_s15 }
  0x6b   : > { %567 = vrot.lane.b32.xlu0 %v401_v17, %s1096_s15 }
  0xa0   : > { %v492_v36 = vpop.permute.xlu1 %491 }
  0xa1   : > { %v480_v37 = vpop.permute.xlu0 %479 }
  0xa2   : > { %v573_v48 = vsel %vm357_vm3, %v374_v45, %v480_v37 }
  0xa3   : > { %v585_v51 = vsel %vm583_vm5, %v573_v48, %v492_v36 }
  0xa4   : > { %v494_v38 = vpop.permute.xlu1 %493 }
  0xa5   : > { %v482_v39 = vpop.permute.xlu0 %481 }
  0xa6   : > { %v576_v52 = vsel %vm357_vm3, %v1229_v5, %v482_v39 }
  0xa7   : > { %v587_v58 = vsel %vm583_vm5, %v576_v52, %v494_v38 }
  0xa8   : > { %v506_v40 = vpop.permute.xlu1 %505 }
  0xa9   : > { %v504_v41 = vpop.permute.xlu0 %503  ;;  %v596_v60 = vsel %vm592_vm6, %v587_v58, %v506_v40 }
  0xaa   : > { %v594_v54 = vsel %vm592_vm6, %v585_v51, %v504_v41 }
  0xac   : > { %v518_v42 = vpop.permute.xlu1 %517 }
  0xad   : > { %v516_v43 = vpop.permute.xlu0 %515  ;;  %v605_v0 = vsel %vm601_vm7, %v596_v60, %v518_v42 }
  0xae   : > { %v603_v56 = vsel %vm601_vm7, %v594_v54, %v516_v43 }
  0xb0   : > { %v530_v46 = vpop.permute.xlu1 %529 }
  0xb1   : > { %v528_v47 = vpop.permute.xlu0 %527  ;;  %v614_v2 = vsel %vm610_vm8, %v605_v0, %v530_v46 }
  0xb2   : > { %v612_v57 = vsel %vm610_vm8, %v603_v56, %v528_v47 }
  0xb4   : > { %v542_v49 = vpop.permute.xlu1 %541 }
  0xb5   : > { %v540_v50 = vpop.permute.xlu0 %539  ;;  %v623_v3 = vsel %vm619_vm9, %v614_v2, %v542_v49 }
  0xb6   : > { %v621_v59 = vsel %vm619_vm9, %v612_v57, %v540_v50 }
  0xb8   : > { %v554_v55 = vpop.permute.xlu1 %553 }
  0xb9   : > { %v552_v53 = vpop.permute.xlu0 %551  ;;  %v632_v5 = vsel %vm628_vm10, %v623_v3, %v554_v55 }
  0xba   : > { %v630_v61 = vsel %vm628_vm10, %v621_v59, %v552_v53 }
  0xbc   : > { %v484_v62 = vpop.permute.xlu1 %483 }
  0xbd   : > { %v564_v63 = vpop.permute.xlu0 %563  ;;  %v579_v19 = vsel %vm357_vm3, %v1227_v4, %v484_v62 }
  0xbe   : > { %v639_v1 = vsel %vm637_vm11, %v630_v61, %v564_v63 }
  0xbf   : > { %1038 = vmatprep.mubr.msk.bf16.mxu0 %vm682_vm12, %v639_v1 }
  0xc0   : > { %v486_v6 = vpop.permute.xlu1 %485 }
  0xc1   : > { %v566_v7 = vpop.permute.xlu0 %565  ;;  %v582_v20 = vsel %vm357_vm3, %v1253_v31, %v486_v6 }
  0xc2   : > { %v641_v8 = vsel %vm637_vm11, %v632_v5, %v566_v7 }
  0xc3   : > { %1039 = vmatmul.mubr.msk.bf16.vlgmr.msra.gmra.mrb[0].mxu0 %vm682_vm12, %v641_v8 }
  0xc4   : > { %v498_v9 = vpop.permute.xlu1 %497 }
  0xc5   : > { %v496_v10 = vpop.permute.xlu0 %495  ;;  %v591_v21 = vsel %vm583_vm5, %v582_v20, %v498_v9 }
  0xc6   : > { %v589_v22 = vsel %vm583_vm5, %v579_v19, %v496_v10 }
  0xc8   : > { %v510_v11 = vpop.permute.xlu1 %509 }
  0xc9   : > { %v508_v12 = vpop.permute.xlu0 %507  ;;  %v600_v23 = vsel %vm592_vm6, %v591_v21, %v510_v11 }
  0xca   : > { %v598_v24 = vsel %vm592_vm6, %v589_v22, %v508_v12 }
  0xcc   : > { %v522_v13 = vpop.permute.xlu1 %521 }
  0xcd   : > { %v520_v14 = vpop.permute.xlu0 %519  ;;  %v609_v27 = vsel %vm601_vm7, %v600_v23, %v522_v13 }
  0xce   : > { %v607_v28 = vsel %vm601_vm7, %v598_v24, %v520_v14 }
  0xd0   : > { %v534_v15 = vpop.permute.xlu1 %533 }
  0xd1   : > { %v532_v16 = vpop.permute.xlu0 %531  ;;  %v618_v29 = vsel %vm610_vm8, %v609_v27, %v534_v15 }
  0xd2   : > { %v616_v4 = vsel %vm610_vm8, %v607_v28, %v532_v16 }
  0xd4   : > { %v546_v17 = vpop.permute.xlu1 %545 }
  0xd5   : > { %v544_v18 = vpop.permute.xlu0 %543  ;;  %v627_v30 = vsel %vm619_vm9, %v618_v29, %v546_v17 }
  0xd6   : > { %v625_v31 = vsel %vm619_vm9, %v616_v4, %v544_v18 }
  0xd8   : > { %v558_v25 = vpop.permute.xlu1 %557 }
  0xd9   : > { %v556_v26 = vpop.permute.xlu0 %555  ;;  %v636_v32 = vsel %vm628_vm10, %v627_v30, %v558_v25 }
  0xda   : > { %v634_v33 = vsel %vm628_vm10, %v625_v31, %v556_v26 }
  0xdc   : > { %v570_v34 = vpop.permute.xlu1 %569 }
  0xdd   : > { %v568_v35 = vpop.permute.xlu0 %567  ;;  %v645_v36 = vsel %vm637_vm11, %v636_v32, %v570_v34 }
  0xde   : > { %v643_v37 = vsel %vm637_vm11, %v634_v33, %v568_v35 }
  0xdf   : > { %1042 = vmatprep.mubr.msk.bf16.mxu1 %vm682_vm12, %v643_v37 }
  0xe0   : > { %1043 = vmatmul.mubr.msk.bf16.vlgmr.msra.gmra.mrb[0].mxu1 %vm682_vm12, %v645_v36 }
 0x196   : > { %v1040_v38 = vpop.f32.mrb[0].mxu0 }
 0x197   : > { %v994_v39 = vpack.c.bf16 %v1040_v38, %v1040_v38  ;;  %v729_v40 = vpop.f32.mrb[1].mxu0  ;;  %v826_v44 = vmul.f32 %v1040_v38, %v1040_v38  ;;  %v804_v52 = vsel %vm357_vm3, %v1040_v38, 0.0 }
 0x198   : > { %v992_v41 = vpack.c.bf16 %v729_v40, %v729_v40  ;;  %v824_v42 = vmul.f32 %v729_v40, %v729_v40  ;;  %v1041_v43 = vpop.f32.mrb[2].mxu0  ;;  %v801_v47 = vsel %vm357_vm3, %v729_v40, 0.0 }
 0x199   : > { %795 = vst.msk [vmem:[%s1155_s9 + $0x8] sm:$0xf] %vm792_vm13, %v994_v39  ;;  %v995_v45 = vpack.c.bf16 %v1041_v43, %v1041_v43  ;;  %v732_v46 = vpop.f32.mrb[3].mxu0  ;;  %v827_v55 = vmul.f32 %v1041_v43, %v1041_v43  ;;  %v835_v58 = vsel %vm357_vm3, %v826_v44, 0.0  ;;  %v806_v59 = vsel %vm357_vm3, %v1041_v43, 0.0 }
 0x19a   : > { %793 = vst.msk [vmem:[%s1155_s9] sm:$0xf] %vm792_vm13, %v992_v41  ;;  %v993_v48 = vpack.c.bf16 %v732_v46, %v732_v46  ;;  %v802_v49 = vsel %vm357_vm3, %v732_v46, 0.0  ;;  %v825_v50 = vmul.f32 %v732_v46, %v732_v46  ;;  %v832_v54 = vsel %vm357_vm3, %v824_v42, 0.0 }
 0x19b   : > { %796 = vst.msk [vmem:[%s1155_s9 + $0xc] sm:$0xf] %vm792_vm13, %v995_v45  ;;  %v803_v51 = vadd.f32 %v802_v49, %v801_v47  ;;  %v837_v62 = vsel %vm357_vm3, %v827_v55, 0.0 }
 0x19c   : > { %794 = vst.msk [vmem:[%s1155_s9 + $0x4] sm:$0xf] %vm792_vm13, %v993_v48  ;;  %v833_v53 = vsel %vm357_vm3, %v825_v50, 0.0 }
 0x19d   : > { %v805_v56 = vadd.f32 %v804_v52, %v803_v51  ;;  %v834_v57 = vadd.f32 %v833_v53, %v832_v54 }
 0x19f   : > { %v836_v60 = vadd.f32 %v835_v58, %v834_v57  ;;  %v807_v61 = vadd.f32 %v806_v59, %v805_v56 }
 0x1a1   : > { %v838_v63 = vadd.f32 %v837_v62, %v836_v60 }
 0x1b3   : > { %v1044_v0 = vpop.f32.mrb[0].mxu1 }
 0x1b4   : > { %v998_v1 = vpack.c.bf16 %v1044_v0, %v1044_v0  ;;  %v745_v2 = vpop.f32.mrb[1].mxu1  ;;  %v830_v14 = vmul.f32 %v1044_v0, %v1044_v0  ;;  %v812_v18 = vsel %vm357_vm3, %v1044_v0, 0.0 }
 0x1b5   : > { %v996_v3 = vpack.c.bf16 %v745_v2, %v745_v2  ;;  %v808_v5 = vsel %vm357_vm3, %v745_v2, 0.0  ;;  %v828_v6 = vmul.f32 %v745_v2, %v745_v2  ;;  %v1045_v7 = vpop.f32.mrb[2].mxu1 }
 0x1b6   : > { %799 = vst.msk [vmem:[%s1155_s9 + $0x18] sm:$0xf] %vm792_vm13, %v998_v1  ;;  %v809_v8 = vadd.f32 %v808_v5, %v807_v61  ;;  %v999_v9 = vpack.c.bf16 %v1045_v7, %v1045_v7  ;;  %v748_v10 = vpop.f32.mrb[3].mxu1  ;;  %v831_v19 = vmul.f32 %v1045_v7, %v1045_v7  ;;  %v814_v22 = vsel %vm357_vm3, %v1045_v7, 0.0 }
 0x1b7   : > { %797 = vst.msk [vmem:[%s1155_s9 + $0x10] sm:$0xf] %vm792_vm13, %v996_v3  ;;  %v839_v11 = vsel %vm357_vm3, %v828_v6, 0.0  ;;  %v997_v12 = vpack.c.bf16 %v748_v10, %v748_v10  ;;  %v810_v13 = vsel %vm357_vm3, %v748_v10, 0.0  ;;  %v829_v17 = vmul.f32 %v748_v10, %v748_v10 }
 0x1b8   : > { %v840_v15 = vadd.f32 %v839_v11, %v838_v63  ;;  %800 = vst.msk [vmem:[%s1155_s9 + $0x1c] sm:$0xf] %vm792_vm13, %v999_v9  ;;  %v811_v16 = vadd.f32 %v810_v13, %v809_v8  ;;  %v843_v24 = vsel %vm357_vm3, %v830_v14, 0.0  ;;  %v845_v27 = vsel %vm357_vm3, %v831_v19, 0.0 }
 0x1b9   : > { %798 = vst.msk [vmem:[%s1155_s9 + $0x14] sm:$0xf] %vm792_vm13, %v997_v12  ;;  %v841_v21 = vsel %vm357_vm3, %v829_v17, 0.0 }
 0x1ba   : > { %v813_v20 = vadd.f32 %v812_v18, %v811_v16  ;;  %v842_v23 = vadd.f32 %v841_v21, %v840_v15 }
 0x1bc   : > { %v815_v25 = vadd.f32 %v814_v22, %v813_v20  ;;  %v844_v26 = vadd.f32 %v843_v24, %v842_v23 }
 0x1be   : > { %v816_v28 = vrot.slane %v815_v25, 4  ;;  %v846_v29 = vadd.f32 %v845_v27, %v844_v26 }
 0x1c0   : > { %v817_v4 = vadd.f32 %v816_v28, %v815_v25  ;;  %v847_v30 = vrot.slane %v846_v29, 4 }
 0x1c2   : > { %v818_v31 = vrot.slane %v817_v4, 2  ;;  %v848_v32 = vadd.f32 %v847_v30, %v846_v29 }
 0x1c4   : > { %v819_v33 = vadd.f32 %v818_v31, %v817_v4  ;;  %v849_v34 = vrot.slane %v848_v32, 2 }
 0x1c6   : > { %v820_v35 = vrot.slane %v819_v33, 1  ;;  %v850_v36 = vadd.f32 %v849_v34, %v848_v32 }
 0x1c8   : > { %v821_v37 = vadd.f32 %v820_v35, %v819_v33  ;;  %v851_v38 = vrot.slane %v850_v36, 1 }
 0x1ca   : > { %823 = vst.msk [vmem:[%s265_s27] sm:$0x1] %vm822_vm14, %v821_v37  ;;  %v852_v39 = vadd.f32 %v851_v38, %v850_v36 }
 0x1cc   : > { %853 = vst.msk [vmem:[%s268_s12] sm:$0x1] %vm822_vm14, %v852_v39 }
 0x1cd PF: > { %s17_s21 = sadd.s32 1, %s1086_s21  }
 0x1ce   : > { %p14_p5 = scmp.ge.s32.totalorder %s17_s21, 4  }
 0x1d0   :  { %16 = sbr.rel (!%p14_p5) target bundleno = 1 (0x1), region = 97 }

</bundles_post_ra>
